<compile_context>
chip_gen: v5e
topology: v5e:2x2
jax: 0.10.0
libtpu: 0.0.40
codegen_flags: <defaults>
</compile_context>

<pallas_src>
import numpy as np
import jax
import jax.numpy as jnp
from jax.experimental import pallas as pl
from jax.experimental.pallas import tpu as pltpu


# ----------------------------------------------------------------------------
# Pallas kernel: full PENet forward for one batch tile.  All operands 2-D.
# ----------------------------------------------------------------------------
def penet_kernel(
    x_ref,        # (T*BB, 2D)  row t*BB+b = [x[b, t, :] | x[b, T-1-t, :]]
    mask_ref,     # (T*BB, 1)   attention mask, row t*BB+b = mask[b, t]
    w_ih_ref,     # (2D, 6H)    fused input weights, cols [r_f r_b | z_f z_b | n_f n_b]
    bias_ref,     # (1, 6H)     b_ih (+ b_hh for r,z gates) in the same layout
    w_hh_ref,     # (2H, 6H)    direction-block-diagonal hidden weights, gate-grouped
    bhn_ref,      # (1, 2H)     [b_hh_n_f | b_hh_n_b] (applied inside r*(.))
    pw_ref,       # (2H, 2)     columns = [w_pe, att_w]
    pbias_ref,    # (T*BB, 2)   col0 = b_pe, col1 = att_b[t] (per-step attention bias)
    heads_w_ref,  # (4H, 9)     rows 0:2H -> max_pool part, 2H:4H -> att_pool part
    heads_b_ref,  # (1, 9)
    # outputs
    logits_ref,   # (BB, T)     PE logits, batch-major
    heads_ref,    # (BB, 9)     9 fused heads
    # scratch
    gx_scr,       # (T*BB, 6H)  hoisted input-gate projections
    h_scr,        # (T*BB, 2H)  hidden-state slab [fwd | bwd], time-aligned
):
    BB, T = logits_ref.shape
    H2 = h_scr.shape[1]
    H = H2 // 2
    H4 = 2 * H2
    H6 = 3 * H2

    # ---- input projection for BOTH directions / all gates: ONE matmul ------
    gx_scr[...] = (
        jnp.dot(x_ref[...], w_ih_ref[...], preferred_element_type=jnp.float32)
        + bias_ref[...])

    w_hh = w_hh_ref[...]          # (2H, 6H) resident as vregs across the recurrence
    bhn = bhn_ref[...]            # (1, 2H)

    # ---- fused bidirectional recurrence: h = [h_f(t=i) | h_b(t=T-1-i)] -----
    # T is small & static -> fully unrolled; one MXU push + one gate set / step.
    h = jnp.zeros((BB, H2), jnp.float32)
    for i in range(T):
        gx = gx_scr[i * BB:(i + 1) * BB, :]                       # (BB, 6H)
        gh = jnp.dot(h, w_hh, preferred_element_type=jnp.float32)  # (BB, 6H)
        r = jax.nn.sigmoid(gx[:, 0:H2] + gh[:, 0:H2])
        z = jax.nn.sigmoid(gx[:, H2:H4] + gh[:, H2:H4])
        n = jnp.tanh(gx[:, H4:H6] + r * (gh[:, H4:H6] + bhn))
        h = (1.0 - z) * n + z * h
        tb = T - 1 - i
        h_scr[i * BB:(i + 1) * BB, 0:H] = h[:, 0:H]        # forward state, time i
        h_scr[tb * BB:(tb + 1) * BB, H:H2] = h[:, H:H2]    # backward state, time T-1-i

    # ---- PE logits + attention pre-scores from ONE matmul on the slab ------
    scores = (jnp.dot(h_scr[...], pw_ref[...], preferred_element_type=jnp.float32)
              + pbias_ref[...])                                    # (T*BB, 2)
    a_raw = jnp.exp(jnp.tanh(scores[:, 1:2])) * mask_ref[...]      # (T*BB, 1)

    # ---- pooling epilogue (one-time, off the serial path) ------------------
    maxp = jnp.full((BB, H2), -jnp.inf, jnp.float32)
    s_ah = jnp.zeros((BB, H2), jnp.float32)   # sum_t a_raw[t] * h[t]
    s_h = jnp.zeros((BB, H2), jnp.float32)    # sum_t h[t]   (for the +1e-10 term)
    den = jnp.zeros((BB, 1), jnp.float32)     # sum_t a_raw[t]
    for t in range(T):
        h_t = h_scr[t * BB:(t + 1) * BB, :]                        # (BB, 2H)
        a_t = a_raw[t * BB:(t + 1) * BB, :]                        # (BB, 1)
        logits_ref[:, t:t + 1] = scores[t * BB:(t + 1) * BB, 0:1]  # (B, T) layout
        maxp = jnp.maximum(maxp, h_t)
        s_ah = s_ah + a_t * h_t
        s_h = s_h + h_t
        den = den + a_t

    # a_norm = a_raw/den + 1e-10  =>  att_pool = s_ah/den + 1e-10 * s_h
    att_pool = s_ah / den + 1e-10 * s_h

    # ---- fused 9-head projection (split-K avoids a lane concat) ------------
    heads_ref[...] = (
        jnp.dot(maxp, heads_w_ref[0:H2, :], preferred_element_type=jnp.float32)
        + jnp.dot(att_pool, heads_w_ref[H2:H4, :], preferred_element_type=jnp.float32)
        + heads_b_ref[...])


# ----------------------------------------------------------------------------
# Wrapper: parameter fusion (gate-grouped, direction-fused) + pallas_call
# ----------------------------------------------------------------------------
def _pack_params(p, T, BB):
    D, H = p["w_ih_f"].shape[1], p["w_ih_f"].shape[2]
    zdh = jnp.zeros((D, H), jnp.float32)
    zhh = jnp.zeros((H, H), jnp.float32)

    wf, wb = p["w_ih_f"], p["w_ih_b"]
    # rows 0:D multiply x(t); rows D:2D multiply x(T-1-t); gate-grouped columns.
    w_ih_c = jnp.concatenate([
        jnp.concatenate([wf[0], zdh, wf[1], zdh, wf[2], zdh], axis=1),
        jnp.concatenate([zdh, wb[0], zdh, wb[1], zdh, wb[2]], axis=1)], axis=0)

    hf, hb = p["w_hh_f"], p["w_hh_b"]
    # rows 0:H multiply h_fwd; rows H:2H multiply h_bwd (block-diagonal by direction).
    w_hh_c = jnp.concatenate([
        jnp.concatenate([hf[0], zhh, hf[1], zhh, hf[2], zhh], axis=1),
        jnp.concatenate([zhh, hb[0], zhh, hb[1], zhh, hb[2]], axis=1)], axis=0)

    bif, bhf = p["b_ih_f"], p["b_hh_f"]
    bib, bhb = p["b_ih_b"], p["b_hh_b"]
    # r, z gates: b_ih + b_hh folded; n gate: b_ih only (b_hh_n goes inside r*(.)).
    bias_c = jnp.concatenate([
        bif[0] + bhf[0], bib[0] + bhb[0],
        bif[1] + bhf[1], bib[1] + bhb[1],
        bif[2], bib[2]]).reshape(1, 6 * H)
    bhn_c = jnp.concatenate([bhf[2], bhb[2]]).reshape(1, 2 * H)

    pw = jnp.stack([p["w_pe"], p["att_w"]], axis=1)                    # (2H, 2)
    pbias = jnp.stack([
        jnp.full((T * BB,), p["b_pe"][0], jnp.float32),
        jnp.repeat(p["att_b"].astype(jnp.float32), BB)], axis=1)       # (T*BB, 2)

    heads_w = jnp.transpose(p["heads_w"], (1, 0))                      # (4H, 9)
    heads_b = p["heads_b"].reshape(1, 9)
    return w_ih_c, bias_c, w_hh_c, bhn_c, pw, pbias, heads_w, heads_b


def penet_forward(x, mask, p, batch_tile=8):
    """x: (B, T, D) float32, mask: (B, T) float32. Returns 10 outputs like PyTorch."""
    B, T, D = x.shape
    H = p["w_hh_f"].shape[-1]
    BB = min(batch_tile, B)
    assert B % BB == 0, (B, BB)
    nb = B // BB

    x = x.astype(jnp.float32)
    mask = mask.astype(jnp.float32)

    # Time-major flatten per batch tile; lane-concat the time-reversed copy so the
    # kernel's single input matmul feeds both GRU directions. (Wrapper-side XLA only.)
    x_tiles = x.reshape(nb, BB, T, D)
    x_fwd = jnp.transpose(x_tiles, (0, 2, 1, 3)).reshape(nb, T * BB, D)
    x_bwd = jnp.transpose(jnp.flip(x_tiles, axis=2), (0, 2, 1, 3)).reshape(nb, T * BB, D)
    x_cat = jnp.concatenate([x_fwd, x_bwd], axis=-1)                   # (nb, T*BB, 2D)

    mask_flat = jnp.transpose(mask.reshape(nb, BB, T), (0, 2, 1)).reshape(nb, T * BB, 1)

    (w_ih_c, bias_c, w_hh_c, bhn_c, pw, pbias, heads_w, heads_b) = _pack_params(p, T, BB)

    in_specs = [
        pl.BlockSpec((None, T * BB, 2 * D), lambda b: (b, 0, 0)),   # x_cat
        pl.BlockSpec((None, T * BB, 1), lambda b: (b, 0, 0)),       # mask_flat
        pl.BlockSpec((2 * D, 6 * H), lambda b: (0, 0)),             # w_ih_c
        pl.BlockSpec((1, 6 * H), lambda b: (0, 0)),                 # bias_c
        pl.BlockSpec((2 * H, 6 * H), lambda b: (0, 0)),             # w_hh_c
        pl.BlockSpec((1, 2 * H), lambda b: (0, 0)),                 # bhn_c
        pl.BlockSpec((2 * H, 2), lambda b: (0, 0)),                 # pw
        pl.BlockSpec((T * BB, 2), lambda b: (0, 0)),                # pbias
        pl.BlockSpec((4 * H, 9), lambda b: (0, 0)),                 # heads_w
        pl.BlockSpec((1, 9), lambda b: (0, 0)),                     # heads_b
    ]
    out_specs = (
        pl.BlockSpec((None, BB, T), lambda b: (b, 0, 0)),           # logits (B,T)
        pl.BlockSpec((None, BB, 9), lambda b: (b, 0, 0)),           # heads
    )
    out_shape = (
        jax.ShapeDtypeStruct((nb, BB, T), jnp.float32),
        jax.ShapeDtypeStruct((nb, BB, 9), jnp.float32),
    )
    scratch_shapes = [
        pltpu.VMEM((T * BB, 6 * H), jnp.float32),   # gx slab
        pltpu.VMEM((T * BB, 2 * H), jnp.float32),   # hidden-state slab
    ]

    logits_bt, heads = pl.pallas_call(
        penet_kernel,
        grid=(nb,),
        in_specs=in_specs,
        out_specs=out_specs,
        out_shape=out_shape,
        scratch_shapes=scratch_shapes,
        compiler_params=pltpu.CompilerParams(dimension_semantics=("parallel",)),
    )(x_cat, mask_flat, w_ih_c, bias_c, w_hh_c, bhn_c, pw, pbias, heads_w, heads_b)

    logits_pe = logits_bt.reshape(B, T)[:, :, None]                    # (B, T, 1)
    heads = heads.reshape(B, 9)
    return (logits_pe,) + tuple(heads[:, i:i + 1] for i in range(9))


# ----------------------------------------------------------------------------
# Deterministic parameter init (PyTorch-style shapes, synthetic values)
# ----------------------------------------------------------------------------
def init_params(key, D, H, T):
    ks = jax.random.split(key, 16)
    s = 1.0 / np.sqrt(H)

    def u(k, shape, scale):
        return jax.random.uniform(k, shape, jnp.float32, -scale, scale)

    p = {}
    # GRU (forward / backward). PyTorch weight_ih (3H, D) stored pre-split and
    # pre-transposed as (3, D, H); weight_hh as (3, H, H); biases (3, H). Gate order r,z,n.
    p["w_ih_f"] = u(ks[0], (3, D, H), s)
    p["w_hh_f"] = u(ks[1], (3, H, H), s)
    p["b_ih_f"] = u(ks[2], (3, H), s)
    p["b_hh_f"] = u(ks[3], (3, H), s)
    p["w_ih_b"] = u(ks[4], (3, D, H), s)
    p["w_hh_b"] = u(ks[5], (3, H, H), s)
    p["b_ih_b"] = u(ks[6], (3, H), s)
    p["b_hh_b"] = u(ks[7], (3, H), s)

    # Attention: weight (2H,) xavier-style, per-step bias (T,).
    lim = np.sqrt(6.0 / (2 * H + 1))
    p["att_w"] = u(ks[8], (2 * H,), lim)
    p["att_b"] = u(ks[9], (T,), 0.1)   # PyTorch inits zeros; random -> stronger check

    # last_linear_pe: Linear(2H, 1)
    s2 = 1.0 / np.sqrt(2 * H)
    p["w_pe"] = u(ks[10], (2 * H,), s2)
    p["b_pe"] = u(ks[11], (1,), s2)

    # 9 heads: Linear(4H, 1) each -> stacked (9, 4H)
    s4 = 1.0 / np.sqrt(4 * H)
    p["heads_w"] = u(ks[12], (9, 4 * H), s4)
    p["heads_b"] = u(ks[13], (9,), s4)
    return p


# ----------------------------------------------------------------------------
# Pure-JAX reference (mirrors the PyTorch forward exactly)
# ----------------------------------------------------------------------------
def ref_forward(x, mask, p):
    B, T, D = x.shape
    H = p["w_hh_f"].shape[-1]

    def run_dir(w_ih, w_hh, b_ih, b_hh, reverse):
        h = jnp.zeros((B, H), jnp.float32)
        out = [None] * T
        ts = range(T - 1, -1, -1) if reverse else range(T)
        for t in ts:
            xt = x[:, t, :]
            r = jax.nn.sigmoid(xt @ w_ih[0] + b_ih[0] + h @ w_hh[0] + b_hh[0])
            z = jax.nn.sigmoid(xt @ w_ih[1] + b_ih[1] + h @ w_hh[1] + b_hh[1])
            n = jnp.tanh(xt @ w_ih[2] + b_ih[2] + r * (h @ w_hh[2] + b_hh[2]))
            h = (1.0 - z) * n + z * h
            out[t] = h
        return jnp.stack(out, axis=1)  # (B, T, H)

    hf = run_dir(p["w_ih_f"], p["w_hh_f"], p["b_ih_f"], p["b_hh_f"], False)
    hb = run_dir(p["w_ih_b"], p["w_hh_b"], p["b_ih_b"], p["b_hh_b"], True)
    h_all = jnp.concatenate([hf, hb], axis=-1)                      # (B, T, 2H)

    logits_pe = h_all @ p["w_pe"][:, None] + p["b_pe"][0]           # (B, T, 1)

    max_pool = jnp.max(h_all, axis=1)                               # (B, 2H)

    eij = (h_all @ p["att_w"][:, None])[:, :, 0] + p["att_b"][None, :]
    eij = jnp.tanh(eij)
    a = jnp.exp(eij) * mask
    a = a / jnp.sum(a, axis=1, keepdims=True) + 1e-10
    att_pool = jnp.sum(h_all * a[:, :, None], axis=1)               # (B, 2H)

    conc = jnp.concatenate([max_pool, att_pool], axis=1)            # (B, 4H)
    heads = conc @ p["heads_w"].T + p["heads_b"][None, :]           # (B, 9)
    return (logits_pe,) + tuple(heads[:, i:i + 1] for i in range(9))


# ----------------------------------------------------------------------------
if __name__ == "__main__":
    B, T, D, H = 2, 8, 16, 32   # small shapes: batch=2, seq=8, input_len=16, lstm_size=32

    key = jax.random.PRNGKey(0)
    kx, km, kp = jax.random.split(key, 3)

    x = jax.random.normal(kx, (B, T, D), jnp.float32)
    mask = (jax.random.uniform(km, (B, T)) > 0.3).astype(jnp.float32)
    mask = mask.at[:, 0].set(1.0)   # avoid all-zero mask rows (div-by-zero in attention)

    params = init_params(kp, D, H, T)

    fwd = jax.jit(penet_forward)
    outs = fwd(x, mask, params)
    outs = jax.block_until_ready(outs)

    # f32-accurate reference (TPU XLA would otherwise use bf16 passes for f32 dots).
    with jax.default_matmul_precision("highest"):
        refs = ref_forward(x, mask, params)
    refs = jax.block_until_ready(refs)

    for o, r in zip(outs, refs):
        assert o.shape == r.shape, (o.shape, r.shape)
        np.testing.assert_allclose(np.asarray(o), np.asarray(r), rtol=1e-3, atol=1e-3)

    print("KERNEL_OK")
</pallas_src>

<mosaic_0001>
module attributes {stable_mosaic.version = 11 : i64} {
  func.func @penet_kernel(%arg0: i32, %arg1: memref<1x16x32xf32, #tpu.memory_space<vmem>>, %arg2: memref<1x16x1xf32, #tpu.memory_space<vmem>>, %arg3: memref<32x192xf32, #tpu.memory_space<vmem>>, %arg4: memref<1x192xf32, #tpu.memory_space<vmem>>, %arg5: memref<64x192xf32, #tpu.memory_space<vmem>>, %arg6: memref<1x64xf32, #tpu.memory_space<vmem>>, %arg7: memref<64x2xf32, #tpu.memory_space<vmem>>, %arg8: memref<16x2xf32, #tpu.memory_space<vmem>>, %arg9: memref<128x9xf32, #tpu.memory_space<vmem>>, %arg10: memref<1x9xf32, #tpu.memory_space<vmem>>, %arg11: memref<1x2x8xf32, #tpu.memory_space<vmem>>, %arg12: memref<1x2x9xf32, #tpu.memory_space<vmem>>, %arg13: memref<16x192xf32, #tpu.memory_space<vmem>>, %arg14: memref<16x64xf32, #tpu.memory_space<vmem>>) attributes {dimension_semantics = [#tpu.dimension_semantics<parallel>], iteration_bounds = array<i64: 1>, scalar_prefetch = 0 : i64, scratch_operands = 2 : i64, tpu.core_type = #tpu.core_type<tc>, window_params = [{transform_indices = @transform_0, window_bounds = array<i64: 1, 16, 32>}, {transform_indices = @transform_1, window_bounds = array<i64: 1, 16, 1>}, {pipeline_mode = #tpu.pipeline_mode<synchronous>, transform_indices = @transform_2, window_bounds = array<i64: 32, 192>}, {pipeline_mode = #tpu.pipeline_mode<synchronous>, transform_indices = @transform_3, window_bounds = array<i64: 1, 192>}, {pipeline_mode = #tpu.pipeline_mode<synchronous>, transform_indices = @transform_4, window_bounds = array<i64: 64, 192>}, {pipeline_mode = #tpu.pipeline_mode<synchronous>, transform_indices = @transform_5, window_bounds = array<i64: 1, 64>}, {pipeline_mode = #tpu.pipeline_mode<synchronous>, transform_indices = @transform_6, window_bounds = array<i64: 64, 2>}, {pipeline_mode = #tpu.pipeline_mode<synchronous>, transform_indices = @transform_7, window_bounds = array<i64: 16, 2>}, {pipeline_mode = #tpu.pipeline_mode<synchronous>, transform_indices = @transform_8, window_bounds = array<i64: 128, 9>}, {pipeline_mode = #tpu.pipeline_mode<synchronous>, transform_indices = @transform_9, window_bounds = array<i64: 1, 9>}, {transform_indices = @transform_10, window_bounds = array<i64: 1, 2, 8>}, {transform_indices = @transform_11, window_bounds = array<i64: 1, 2, 9>}]} {
    %c0 = arith.constant 0 : index
    %c0_0 = arith.constant 0 : index
    %c0_1 = arith.constant 0 : index
    %0 = vector.load %arg1[%c0, %c0_0, %c0_1] : memref<1x16x32xf32, #tpu.memory_space<vmem>>, vector<1x16x32xf32>
    %1 = vector.shape_cast %0 : vector<1x16x32xf32> to vector<16x32xf32>
    %c0_2 = arith.constant 0 : index
    %c0_3 = arith.constant 0 : index
    %2 = vector.load %arg3[%c0_2, %c0_3] : memref<32x192xf32, #tpu.memory_space<vmem>>, vector<32x192xf32>
    %cst = arith.constant dense<0.000000e+00> : vector<16x192xf32>
    %3 = tpu.matmul %1, %2, %cst {dimension_numbers = #tpu.dot_dimension_numbers<[1], [0], [0], [1], [0, 0, 1, 1], [], []>} : vector<16x32xf32>, vector<32x192xf32>, vector<16x192xf32> -> vector<16x192xf32>
    %c0_4 = arith.constant 0 : index
    %c0_5 = arith.constant 0 : index
    %4 = vector.load %arg4[%c0_4, %c0_5] : memref<1x192xf32, #tpu.memory_space<vmem>>, vector<1x192xf32>
    %5 = vector.broadcast %4 : vector<1x192xf32> to vector<16x192xf32>
    %6 = arith.addf %3, %5 : vector<16x192xf32>
    %c0_6 = arith.constant 0 : index
    %c0_7 = arith.constant 0 : index
    %7 = vector.load %arg13[%c0_6, %c0_7] : memref<16x192xf32, #tpu.memory_space<vmem>>, vector<16x192xf32>
    tpu.vector_store %arg13[%c0_6, %c0_7], %6 {strides = array<i32>} : memref<16x192xf32, #tpu.memory_space<vmem>>, vector<16x192xf32>,
    %c0_8 = arith.constant 0 : index
    %c0_9 = arith.constant 0 : index
    %8 = vector.load %arg5[%c0_8, %c0_9] : memref<64x192xf32, #tpu.memory_space<vmem>>, vector<64x192xf32>
    %c0_10 = arith.constant 0 : index
    %c0_11 = arith.constant 0 : index
    %9 = vector.load %arg6[%c0_10, %c0_11] : memref<1x64xf32, #tpu.memory_space<vmem>>, vector<1x64xf32>
    %cst_12 = arith.constant 0.000000e+00 : f32
    %10 = vector.broadcast %cst_12 : f32 to vector<2x64xf32>
    %c0_13 = arith.constant 0 : index
    %c0_14 = arith.constant 0 : index
    %11 = vector.load %arg13[%c0_13, %c0_14] : memref<16x192xf32, #tpu.memory_space<vmem>>, vector<2x192xf32>
    %cst_15 = arith.constant dense<0.000000e+00> : vector<2x192xf32>
    %12 = tpu.matmul %10, %8, %cst_15 {dimension_numbers = #tpu.dot_dimension_numbers<[1], [0], [0], [1], [0, 0, 1, 1], [], []>} : vector<2x64xf32>, vector<64x192xf32>, vector<2x192xf32> -> vector<2x192xf32>
    %13 = vector.extract_strided_slice %11 {offsets = [0, 0], sizes = [2, 64], strides = [1, 1]} : vector<2x192xf32> to vector<2x64xf32>
    %14 = vector.extract_strided_slice %12 {offsets = [0, 0], sizes = [2, 64], strides = [1, 1]} : vector<2x192xf32> to vector<2x64xf32>
    %15 = arith.addf %13, %14 : vector<2x64xf32>
    %16 = arith.negf %15 : vector<2x64xf32>
    %17 = math.exp %16 : vector<2x64xf32>
    %cst_16 = arith.constant 1.000000e+00 : f32
    %18 = vector.broadcast %cst_16 : f32 to vector<2x64xf32>
    %19 = arith.addf %18, %17 : vector<2x64xf32>
    %20 = arith.divf %18, %19 : vector<2x64xf32>
    %21 = vector.extract_strided_slice %11 {offsets = [0, 64], sizes = [2, 64], strides = [1, 1]} : vector<2x192xf32> to vector<2x64xf32>
    %22 = vector.extract_strided_slice %12 {offsets = [0, 64], sizes = [2, 64], strides = [1, 1]} : vector<2x192xf32> to vector<2x64xf32>
    %23 = arith.addf %21, %22 : vector<2x64xf32>
    %24 = arith.negf %23 : vector<2x64xf32>
    %25 = math.exp %24 : vector<2x64xf32>
    %cst_17 = arith.constant 1.000000e+00 : f32
    %26 = vector.broadcast %cst_17 : f32 to vector<2x64xf32>
    %27 = arith.addf %26, %25 : vector<2x64xf32>
    %28 = arith.divf %26, %27 : vector<2x64xf32>
    %29 = vector.extract_strided_slice %11 {offsets = [0, 128], sizes = [2, 64], strides = [1, 1]} : vector<2x192xf32> to vector<2x64xf32>
    %30 = vector.extract_strided_slice %12 {offsets = [0, 128], sizes = [2, 64], strides = [1, 1]} : vector<2x192xf32> to vector<2x64xf32>
    %31 = vector.broadcast %9 : vector<1x64xf32> to vector<2x64xf32>
    %32 = arith.addf %30, %31 : vector<2x64xf32>
    %33 = arith.mulf %20, %32 : vector<2x64xf32>
    %34 = arith.addf %29, %33 : vector<2x64xf32>
    %35 = math.tanh %34 : vector<2x64xf32>
    %cst_18 = arith.constant 1.000000e+00 : f32
    %36 = vector.broadcast %cst_18 : f32 to vector<2x64xf32>
    %37 = arith.subf %36, %28 : vector<2x64xf32>
    %38 = arith.mulf %37, %35 : vector<2x64xf32>
    %39 = arith.mulf %28, %10 : vector<2x64xf32>
    %40 = arith.addf %38, %39 : vector<2x64xf32>
    %41 = vector.extract_strided_slice %40 {offsets = [0, 0], sizes = [2, 32], strides = [1, 1]} : vector<2x64xf32> to vector<2x32xf32>
    %c0_19 = arith.constant 0 : index
    %c0_20 = arith.constant 0 : index
    %42 = vector.load %arg14[%c0_19, %c0_20] : memref<16x64xf32, #tpu.memory_space<vmem>>, vector<2x32xf32>
    tpu.vector_store %arg14[%c0_19, %c0_20], %41 {strides = array<i32>} : memref<16x64xf32, #tpu.memory_space<vmem>>, vector<2x32xf32>,
    %43 = vector.extract_strided_slice %40 {offsets = [0, 32], sizes = [2, 32], strides = [1, 1]} : vector<2x64xf32> to vector<2x32xf32>
    %c14 = arith.constant 14 : index
    %c32 = arith.constant 32 : index
    %44 = vector.load %arg14[%c14, %c32] : memref<16x64xf32, #tpu.memory_space<vmem>>, vector<2x32xf32>
    tpu.vector_store %arg14[%c14, %c32], %43 {strides = array<i32>} : memref<16x64xf32, #tpu.memory_space<vmem>>, vector<2x32xf32>,
    %c2 = arith.constant 2 : index
    %c0_21 = arith.constant 0 : index
    %45 = vector.load %arg13[%c2, %c0_21] : memref<16x192xf32, #tpu.memory_space<vmem>>, vector<2x192xf32>
    %cst_22 = arith.constant dense<0.000000e+00> : vector<2x192xf32>
    %46 = tpu.matmul %40, %8, %cst_22 {dimension_numbers = #tpu.dot_dimension_numbers<[1], [0], [0], [1], [0, 0, 1, 1], [], []>} : vector<2x64xf32>, vector<64x192xf32>, vector<2x192xf32> -> vector<2x192xf32>
    %47 = vector.extract_strided_slice %45 {offsets = [0, 0], sizes = [2, 64], strides = [1, 1]} : vector<2x192xf32> to vector<2x64xf32>
    %48 = vector.extract_strided_slice %46 {offsets = [0, 0], sizes = [2, 64], strides = [1, 1]} : vector<2x192xf32> to vector<2x64xf32>
    %49 = arith.addf %47, %48 : vector<2x64xf32>
    %50 = arith.negf %49 : vector<2x64xf32>
    %51 = math.exp %50 : vector<2x64xf32>
    %cst_23 = arith.constant 1.000000e+00 : f32
    %52 = vector.broadcast %cst_23 : f32 to vector<2x64xf32>
    %53 = arith.addf %52, %51 : vector<2x64xf32>
    %54 = arith.divf %52, %53 : vector<2x64xf32>
    %55 = vector.extract_strided_slice %45 {offsets = [0, 64], sizes = [2, 64], strides = [1, 1]} : vector<2x192xf32> to vector<2x64xf32>
    %56 = vector.extract_strided_slice %46 {offsets = [0, 64], sizes = [2, 64], strides = [1, 1]} : vector<2x192xf32> to vector<2x64xf32>
    %57 = arith.addf %55, %56 : vector<2x64xf32>
    %58 = arith.negf %57 : vector<2x64xf32>
    %59 = math.exp %58 : vector<2x64xf32>
    %cst_24 = arith.constant 1.000000e+00 : f32
    %60 = vector.broadcast %cst_24 : f32 to vector<2x64xf32>
    %61 = arith.addf %60, %59 : vector<2x64xf32>
    %62 = arith.divf %60, %61 : vector<2x64xf32>
    %63 = vector.extract_strided_slice %45 {offsets = [0, 128], sizes = [2, 64], strides = [1, 1]} : vector<2x192xf32> to vector<2x64xf32>
    %64 = vector.extract_strided_slice %46 {offsets = [0, 128], sizes = [2, 64], strides = [1, 1]} : vector<2x192xf32> to vector<2x64xf32>
    %65 = vector.broadcast %9 : vector<1x64xf32> to vector<2x64xf32>
    %66 = arith.addf %64, %65 : vector<2x64xf32>
    %67 = arith.mulf %54, %66 : vector<2x64xf32>
    %68 = arith.addf %63, %67 : vector<2x64xf32>
    %69 = math.tanh %68 : vector<2x64xf32>
    %cst_25 = arith.constant 1.000000e+00 : f32
    %70 = vector.broadcast %cst_25 : f32 to vector<2x64xf32>
    %71 = arith.subf %70, %62 : vector<2x64xf32>
    %72 = arith.mulf %71, %69 : vector<2x64xf32>
    %73 = arith.mulf %62, %40 : vector<2x64xf32>
    %74 = arith.addf %72, %73 : vector<2x64xf32>
    %75 = vector.extract_strided_slice %74 {offsets = [0, 0], sizes = [2, 32], strides = [1, 1]} : vector<2x64xf32> to vector<2x32xf32>
    %c2_26 = arith.constant 2 : index
    %c0_27 = arith.constant 0 : index
    %76 = vector.load %arg14[%c2_26, %c0_27] : memref<16x64xf32, #tpu.memory_space<vmem>>, vector<2x32xf32>
    tpu.vector_store %arg14[%c2_26, %c0_27], %75 {strides = array<i32>} : memref<16x64xf32, #tpu.memory_space<vmem>>, vector<2x32xf32>,
    %77 = vector.extract_strided_slice %74 {offsets = [0, 32], sizes = [2, 32], strides = [1, 1]} : vector<2x64xf32> to vector<2x32xf32>
    %c12 = arith.constant 12 : index
    %c32_28 = arith.constant 32 : index
    %78 = vector.load %arg14[%c12, %c32_28] : memref<16x64xf32, #tpu.memory_space<vmem>>, vector<2x32xf32>
    tpu.vector_store %arg14[%c12, %c32_28], %77 {strides = array<i32>} : memref<16x64xf32, #tpu.memory_space<vmem>>, vector<2x32xf32>,
    %c4 = arith.constant 4 : index
    %c0_29 = arith.constant 0 : index
    %79 = vector.load %arg13[%c4, %c0_29] : memref<16x192xf32, #tpu.memory_space<vmem>>, vector<2x192xf32>
    %cst_30 = arith.constant dense<0.000000e+00> : vector<2x192xf32>
    %80 = tpu.matmul %74, %8, %cst_30 {dimension_numbers = #tpu.dot_dimension_numbers<[1], [0], [0], [1], [0, 0, 1, 1], [], []>} : vector<2x64xf32>, vector<64x192xf32>, vector<2x192xf32> -> vector<2x192xf32>
    %81 = vector.extract_strided_slice %79 {offsets = [0, 0], sizes = [2, 64], strides = [1, 1]} : vector<2x192xf32> to vector<2x64xf32>
    %82 = vector.extract_strided_slice %80 {offsets = [0, 0], sizes = [2, 64], strides = [1, 1]} : vector<2x192xf32> to vector<2x64xf32>
    %83 = arith.addf %81, %82 : vector<2x64xf32>
    %84 = arith.negf %83 : vector<2x64xf32>
    %85 = math.exp %84 : vector<2x64xf32>
    %cst_31 = arith.constant 1.000000e+00 : f32
    %86 = vector.broadcast %cst_31 : f32 to vector<2x64xf32>
    %87 = arith.addf %86, %85 : vector<2x64xf32>
    %88 = arith.divf %86, %87 : vector<2x64xf32>
    %89 = vector.extract_strided_slice %79 {offsets = [0, 64], sizes = [2, 64], strides = [1, 1]} : vector<2x192xf32> to vector<2x64xf32>
    %90 = vector.extract_strided_slice %80 {offsets = [0, 64], sizes = [2, 64], strides = [1, 1]} : vector<2x192xf32> to vector<2x64xf32>
    %91 = arith.addf %89, %90 : vector<2x64xf32>
    %92 = arith.negf %91 : vector<2x64xf32>
    %93 = math.exp %92 : vector<2x64xf32>
    %cst_32 = arith.constant 1.000000e+00 : f32
    %94 = vector.broadcast %cst_32 : f32 to vector<2x64xf32>
    %95 = arith.addf %94, %93 : vector<2x64xf32>
    %96 = arith.divf %94, %95 : vector<2x64xf32>
    %97 = vector.extract_strided_slice %79 {offsets = [0, 128], sizes = [2, 64], strides = [1, 1]} : vector<2x192xf32> to vector<2x64xf32>
    %98 = vector.extract_strided_slice %80 {offsets = [0, 128], sizes = [2, 64], strides = [1, 1]} : vector<2x192xf32> to vector<2x64xf32>
    %99 = vector.broadcast %9 : vector<1x64xf32> to vector<2x64xf32>
    %100 = arith.addf %98, %99 : vector<2x64xf32>
    %101 = arith.mulf %88, %100 : vector<2x64xf32>
    %102 = arith.addf %97, %101 : vector<2x64xf32>
    %103 = math.tanh %102 : vector<2x64xf32>
    %cst_33 = arith.constant 1.000000e+00 : f32
    %104 = vector.broadcast %cst_33 : f32 to vector<2x64xf32>
    %105 = arith.subf %104, %96 : vector<2x64xf32>
    %106 = arith.mulf %105, %103 : vector<2x64xf32>
    %107 = arith.mulf %96, %74 : vector<2x64xf32>
    %108 = arith.addf %106, %107 : vector<2x64xf32>
    %109 = vector.extract_strided_slice %108 {offsets = [0, 0], sizes = [2, 32], strides = [1, 1]} : vector<2x64xf32> to vector<2x32xf32>
    %c4_34 = arith.constant 4 : index
    %c0_35 = arith.constant 0 : index
    %110 = vector.load %arg14[%c4_34, %c0_35] : memref<16x64xf32, #tpu.memory_space<vmem>>, vector<2x32xf32>
    tpu.vector_store %arg14[%c4_34, %c0_35], %109 {strides = array<i32>} : memref<16x64xf32, #tpu.memory_space<vmem>>, vector<2x32xf32>,
    %111 = vector.extract_strided_slice %108 {offsets = [0, 32], sizes = [2, 32], strides = [1, 1]} : vector<2x64xf32> to vector<2x32xf32>
    %c10 = arith.constant 10 : index
    %c32_36 = arith.constant 32 : index
    %112 = vector.load %arg14[%c10, %c32_36] : memref<16x64xf32, #tpu.memory_space<vmem>>, vector<2x32xf32>
    tpu.vector_store %arg14[%c10, %c32_36], %111 {strides = array<i32>} : memref<16x64xf32, #tpu.memory_space<vmem>>, vector<2x32xf32>,
    %c6 = arith.constant 6 : index
    %c0_37 = arith.constant 0 : index
    %113 = vector.load %arg13[%c6, %c0_37] : memref<16x192xf32, #tpu.memory_space<vmem>>, vector<2x192xf32>
    %cst_38 = arith.constant dense<0.000000e+00> : vector<2x192xf32>
    %114 = tpu.matmul %108, %8, %cst_38 {dimension_numbers = #tpu.dot_dimension_numbers<[1], [0], [0], [1], [0, 0, 1, 1], [], []>} : vector<2x64xf32>, vector<64x192xf32>, vector<2x192xf32> -> vector<2x192xf32>
    %115 = vector.extract_strided_slice %113 {offsets = [0, 0], sizes = [2, 64], strides = [1, 1]} : vector<2x192xf32> to vector<2x64xf32>
    %116 = vector.extract_strided_slice %114 {offsets = [0, 0], sizes = [2, 64], strides = [1, 1]} : vector<2x192xf32> to vector<2x64xf32>
    %117 = arith.addf %115, %116 : vector<2x64xf32>
    %118 = arith.negf %117 : vector<2x64xf32>
    %119 = math.exp %118 : vector<2x64xf32>
    %cst_39 = arith.constant 1.000000e+00 : f32
    %120 = vector.broadcast %cst_39 : f32 to vector<2x64xf32>
    %121 = arith.addf %120, %119 : vector<2x64xf32>
    %122 = arith.divf %120, %121 : vector<2x64xf32>
    %123 = vector.extract_strided_slice %113 {offsets = [0, 64], sizes = [2, 64], strides = [1, 1]} : vector<2x192xf32> to vector<2x64xf32>
    %124 = vector.extract_strided_slice %114 {offsets = [0, 64], sizes = [2, 64], strides = [1, 1]} : vector<2x192xf32> to vector<2x64xf32>
    %125 = arith.addf %123, %124 : vector<2x64xf32>
    %126 = arith.negf %125 : vector<2x64xf32>
    %127 = math.exp %126 : vector<2x64xf32>
    %cst_40 = arith.constant 1.000000e+00 : f32
    %128 = vector.broadcast %cst_40 : f32 to vector<2x64xf32>
    %129 = arith.addf %128, %127 : vector<2x64xf32>
    %130 = arith.divf %128, %129 : vector<2x64xf32>
    %131 = vector.extract_strided_slice %113 {offsets = [0, 128], sizes = [2, 64], strides = [1, 1]} : vector<2x192xf32> to vector<2x64xf32>
    %132 = vector.extract_strided_slice %114 {offsets = [0, 128], sizes = [2, 64], strides = [1, 1]} : vector<2x192xf32> to vector<2x64xf32>
    %133 = vector.broadcast %9 : vector<1x64xf32> to vector<2x64xf32>
    %134 = arith.addf %132, %133 : vector<2x64xf32>
    %135 = arith.mulf %122, %134 : vector<2x64xf32>
    %136 = arith.addf %131, %135 : vector<2x64xf32>
    %137 = math.tanh %136 : vector<2x64xf32>
    %cst_41 = arith.constant 1.000000e+00 : f32
    %138 = vector.broadcast %cst_41 : f32 to vector<2x64xf32>
    %139 = arith.subf %138, %130 : vector<2x64xf32>
    %140 = arith.mulf %139, %137 : vector<2x64xf32>
    %141 = arith.mulf %130, %108 : vector<2x64xf32>
    %142 = arith.addf %140, %141 : vector<2x64xf32>
    %143 = vector.extract_strided_slice %142 {offsets = [0, 0], sizes = [2, 32], strides = [1, 1]} : vector<2x64xf32> to vector<2x32xf32>
    %c6_42 = arith.constant 6 : index
    %c0_43 = arith.constant 0 : index
    %144 = vector.load %arg14[%c6_42, %c0_43] : memref<16x64xf32, #tpu.memory_space<vmem>>, vector<2x32xf32>
    tpu.vector_store %arg14[%c6_42, %c0_43], %143 {strides = array<i32>} : memref<16x64xf32, #tpu.memory_space<vmem>>, vector<2x32xf32>,
    %145 = vector.extract_strided_slice %142 {offsets = [0, 32], sizes = [2, 32], strides = [1, 1]} : vector<2x64xf32> to vector<2x32xf32>
    %c8 = arith.constant 8 : index
    %c32_44 = arith.constant 32 : index
    %146 = vector.load %arg14[%c8, %c32_44] : memref<16x64xf32, #tpu.memory_space<vmem>>, vector<2x32xf32>
    tpu.vector_store %arg14[%c8, %c32_44], %145 {strides = array<i32>} : memref<16x64xf32, #tpu.memory_space<vmem>>, vector<2x32xf32>,
    %c8_45 = arith.constant 8 : index
    %c0_46 = arith.constant 0 : index
    %147 = vector.load %arg13[%c8_45, %c0_46] : memref<16x192xf32, #tpu.memory_space<vmem>>, vector<2x192xf32>
    %cst_47 = arith.constant dense<0.000000e+00> : vector<2x192xf32>
    %148 = tpu.matmul %142, %8, %cst_47 {dimension_numbers = #tpu.dot_dimension_numbers<[1], [0], [0], [1], [0, 0, 1, 1], [], []>} : vector<2x64xf32>, vector<64x192xf32>, vector<2x192xf32> -> vector<2x192xf32>
    %149 = vector.extract_strided_slice %147 {offsets = [0, 0], sizes = [2, 64], strides = [1, 1]} : vector<2x192xf32> to vector<2x64xf32>
    %150 = vector.extract_strided_slice %148 {offsets = [0, 0], sizes = [2, 64], strides = [1, 1]} : vector<2x192xf32> to vector<2x64xf32>
    %151 = arith.addf %149, %150 : vector<2x64xf32>
    %152 = arith.negf %151 : vector<2x64xf32>
    %153 = math.exp %152 : vector<2x64xf32>
    %cst_48 = arith.constant 1.000000e+00 : f32
    %154 = vector.broadcast %cst_48 : f32 to vector<2x64xf32>
    %155 = arith.addf %154, %153 : vector<2x64xf32>
    %156 = arith.divf %154, %155 : vector<2x64xf32>
    %157 = vector.extract_strided_slice %147 {offsets = [0, 64], sizes = [2, 64], strides = [1, 1]} : vector<2x192xf32> to vector<2x64xf32>
    %158 = vector.extract_strided_slice %148 {offsets = [0, 64], sizes = [2, 64], strides = [1, 1]} : vector<2x192xf32> to vector<2x64xf32>
    %159 = arith.addf %157, %158 : vector<2x64xf32>
    %160 = arith.negf %159 : vector<2x64xf32>
    %161 = math.exp %160 : vector<2x64xf32>
    %cst_49 = arith.constant 1.000000e+00 : f32
    %162 = vector.broadcast %cst_49 : f32 to vector<2x64xf32>
    %163 = arith.addf %162, %161 : vector<2x64xf32>
    %164 = arith.divf %162, %163 : vector<2x64xf32>
    %165 = vector.extract_strided_slice %147 {offsets = [0, 128], sizes = [2, 64], strides = [1, 1]} : vector<2x192xf32> to vector<2x64xf32>
    %166 = vector.extract_strided_slice %148 {offsets = [0, 128], sizes = [2, 64], strides = [1, 1]} : vector<2x192xf32> to vector<2x64xf32>
    %167 = vector.broadcast %9 : vector<1x64xf32> to vector<2x64xf32>
    %168 = arith.addf %166, %167 : vector<2x64xf32>
    %169 = arith.mulf %156, %168 : vector<2x64xf32>
    %170 = arith.addf %165, %169 : vector<2x64xf32>
    %171 = math.tanh %170 : vector<2x64xf32>
    %cst_50 = arith.constant 1.000000e+00 : f32
    %172 = vector.broadcast %cst_50 : f32 to vector<2x64xf32>
    %173 = arith.subf %172, %164 : vector<2x64xf32>
    %174 = arith.mulf %173, %171 : vector<2x64xf32>
    %175 = arith.mulf %164, %142 : vector<2x64xf32>
    %176 = arith.addf %174, %175 : vector<2x64xf32>
    %177 = vector.extract_strided_slice %176 {offsets = [0, 0], sizes = [2, 32], strides = [1, 1]} : vector<2x64xf32> to vector<2x32xf32>
    %c8_51 = arith.constant 8 : index
    %c0_52 = arith.constant 0 : index
    %178 = vector.load %arg14[%c8_51, %c0_52] : memref<16x64xf32, #tpu.memory_space<vmem>>, vector<2x32xf32>
    tpu.vector_store %arg14[%c8_51, %c0_52], %177 {strides = array<i32>} : memref<16x64xf32, #tpu.memory_space<vmem>>, vector<2x32xf32>,
    %179 = vector.extract_strided_slice %176 {offsets = [0, 32], sizes = [2, 32], strides = [1, 1]} : vector<2x64xf32> to vector<2x32xf32>
    %c6_53 = arith.constant 6 : index
    %c32_54 = arith.constant 32 : index
    %180 = vector.load %arg14[%c6_53, %c32_54] : memref<16x64xf32, #tpu.memory_space<vmem>>, vector<2x32xf32>
    tpu.vector_store %arg14[%c6_53, %c32_54], %179 {strides = array<i32>} : memref<16x64xf32, #tpu.memory_space<vmem>>, vector<2x32xf32>,
    %c10_55 = arith.constant 10 : index
    %c0_56 = arith.constant 0 : index
    %181 = vector.load %arg13[%c10_55, %c0_56] : memref<16x192xf32, #tpu.memory_space<vmem>>, vector<2x192xf32>
    %cst_57 = arith.constant dense<0.000000e+00> : vector<2x192xf32>
    %182 = tpu.matmul %176, %8, %cst_57 {dimension_numbers = #tpu.dot_dimension_numbers<[1], [0], [0], [1], [0, 0, 1, 1], [], []>} : vector<2x64xf32>, vector<64x192xf32>, vector<2x192xf32> -> vector<2x192xf32>
    %183 = vector.extract_strided_slice %181 {offsets = [0, 0], sizes = [2, 64], strides = [1, 1]} : vector<2x192xf32> to vector<2x64xf32>
    %184 = vector.extract_strided_slice %182 {offsets = [0, 0], sizes = [2, 64], strides = [1, 1]} : vector<2x192xf32> to vector<2x64xf32>
    %185 = arith.addf %183, %184 : vector<2x64xf32>
    %186 = arith.negf %185 : vector<2x64xf32>
    %187 = math.exp %186 : vector<2x64xf32>
    %cst_58 = arith.constant 1.000000e+00 : f32
    %188 = vector.broadcast %cst_58 : f32 to vector<2x64xf32>
    %189 = arith.addf %188, %187 : vector<2x64xf32>
    %190 = arith.divf %188, %189 : vector<2x64xf32>
    %191 = vector.extract_strided_slice %181 {offsets = [0, 64], sizes = [2, 64], strides = [1, 1]} : vector<2x192xf32> to vector<2x64xf32>
    %192 = vector.extract_strided_slice %182 {offsets = [0, 64], sizes = [2, 64], strides = [1, 1]} : vector<2x192xf32> to vector<2x64xf32>
    %193 = arith.addf %191, %192 : vector<2x64xf32>
    %194 = arith.negf %193 : vector<2x64xf32>
    %195 = math.exp %194 : vector<2x64xf32>
    %cst_59 = arith.constant 1.000000e+00 : f32
    %196 = vector.broadcast %cst_59 : f32 to vector<2x64xf32>
    %197 = arith.addf %196, %195 : vector<2x64xf32>
    %198 = arith.divf %196, %197 : vector<2x64xf32>
    %199 = vector.extract_strided_slice %181 {offsets = [0, 128], sizes = [2, 64], strides = [1, 1]} : vector<2x192xf32> to vector<2x64xf32>
    %200 = vector.extract_strided_slice %182 {offsets = [0, 128], sizes = [2, 64], strides = [1, 1]} : vector<2x192xf32> to vector<2x64xf32>
    %201 = vector.broadcast %9 : vector<1x64xf32> to vector<2x64xf32>
    %202 = arith.addf %200, %201 : vector<2x64xf32>
    %203 = arith.mulf %190, %202 : vector<2x64xf32>
    %204 = arith.addf %199, %203 : vector<2x64xf32>
    %205 = math.tanh %204 : vector<2x64xf32>
    %cst_60 = arith.constant 1.000000e+00 : f32
    %206 = vector.broadcast %cst_60 : f32 to vector<2x64xf32>
    %207 = arith.subf %206, %198 : vector<2x64xf32>
    %208 = arith.mulf %207, %205 : vector<2x64xf32>
    %209 = arith.mulf %198, %176 : vector<2x64xf32>
    %210 = arith.addf %208, %209 : vector<2x64xf32>
    %211 = vector.extract_strided_slice %210 {offsets = [0, 0], sizes = [2, 32], strides = [1, 1]} : vector<2x64xf32> to vector<2x32xf32>
    %c10_61 = arith.constant 10 : index
    %c0_62 = arith.constant 0 : index
    %212 = vector.load %arg14[%c10_61, %c0_62] : memref<16x64xf32, #tpu.memory_space<vmem>>, vector<2x32xf32>
    tpu.vector_store %arg14[%c10_61, %c0_62], %211 {strides = array<i32>} : memref<16x64xf32, #tpu.memory_space<vmem>>, vector<2x32xf32>,
    %213 = vector.extract_strided_slice %210 {offsets = [0, 32], sizes = [2, 32], strides = [1, 1]} : vector<2x64xf32> to vector<2x32xf32>
    %c4_63 = arith.constant 4 : index
    %c32_64 = arith.constant 32 : index
    %214 = vector.load %arg14[%c4_63, %c32_64] : memref<16x64xf32, #tpu.memory_space<vmem>>, vector<2x32xf32>
    tpu.vector_store %arg14[%c4_63, %c32_64], %213 {strides = array<i32>} : memref<16x64xf32, #tpu.memory_space<vmem>>, vector<2x32xf32>,
    %c12_65 = arith.constant 12 : index
    %c0_66 = arith.constant 0 : index
    %215 = vector.load %arg13[%c12_65, %c0_66] : memref<16x192xf32, #tpu.memory_space<vmem>>, vector<2x192xf32>
    %cst_67 = arith.constant dense<0.000000e+00> : vector<2x192xf32>
    %216 = tpu.matmul %210, %8, %cst_67 {dimension_numbers = #tpu.dot_dimension_numbers<[1], [0], [0], [1], [0, 0, 1, 1], [], []>} : vector<2x64xf32>, vector<64x192xf32>, vector<2x192xf32> -> vector<2x192xf32>
    %217 = vector.extract_strided_slice %215 {offsets = [0, 0], sizes = [2, 64], strides = [1, 1]} : vector<2x192xf32> to vector<2x64xf32>
    %218 = vector.extract_strided_slice %216 {offsets = [0, 0], sizes = [2, 64], strides = [1, 1]} : vector<2x192xf32> to vector<2x64xf32>
    %219 = arith.addf %217, %218 : vector<2x64xf32>
    %220 = arith.negf %219 : vector<2x64xf32>
    %221 = math.exp %220 : vector<2x64xf32>
    %cst_68 = arith.constant 1.000000e+00 : f32
    %222 = vector.broadcast %cst_68 : f32 to vector<2x64xf32>
    %223 = arith.addf %222, %221 : vector<2x64xf32>
    %224 = arith.divf %222, %223 : vector<2x64xf32>
    %225 = vector.extract_strided_slice %215 {offsets = [0, 64], sizes = [2, 64], strides = [1, 1]} : vector<2x192xf32> to vector<2x64xf32>
    %226 = vector.extract_strided_slice %216 {offsets = [0, 64], sizes = [2, 64], strides = [1, 1]} : vector<2x192xf32> to vector<2x64xf32>
    %227 = arith.addf %225, %226 : vector<2x64xf32>
    %228 = arith.negf %227 : vector<2x64xf32>
    %229 = math.exp %228 : vector<2x64xf32>
    %cst_69 = arith.constant 1.000000e+00 : f32
    %230 = vector.broadcast %cst_69 : f32 to vector<2x64xf32>
    %231 = arith.addf %230, %229 : vector<2x64xf32>
    %232 = arith.divf %230, %231 : vector<2x64xf32>
    %233 = vector.extract_strided_slice %215 {offsets = [0, 128], sizes = [2, 64], strides = [1, 1]} : vector<2x192xf32> to vector<2x64xf32>
    %234 = vector.extract_strided_slice %216 {offsets = [0, 128], sizes = [2, 64], strides = [1, 1]} : vector<2x192xf32> to vector<2x64xf32>
    %235 = vector.broadcast %9 : vector<1x64xf32> to vector<2x64xf32>
    %236 = arith.addf %234, %235 : vector<2x64xf32>
    %237 = arith.mulf %224, %236 : vector<2x64xf32>
    %238 = arith.addf %233, %237 : vector<2x64xf32>
    %239 = math.tanh %238 : vector<2x64xf32>
    %cst_70 = arith.constant 1.000000e+00 : f32
    %240 = vector.broadcast %cst_70 : f32 to vector<2x64xf32>
    %241 = arith.subf %240, %232 : vector<2x64xf32>
    %242 = arith.mulf %241, %239 : vector<2x64xf32>
    %243 = arith.mulf %232, %210 : vector<2x64xf32>
    %244 = arith.addf %242, %243 : vector<2x64xf32>
    %245 = vector.extract_strided_slice %244 {offsets = [0, 0], sizes = [2, 32], strides = [1, 1]} : vector<2x64xf32> to vector<2x32xf32>
    %c12_71 = arith.constant 12 : index
    %c0_72 = arith.constant 0 : index
    %246 = vector.load %arg14[%c12_71, %c0_72] : memref<16x64xf32, #tpu.memory_space<vmem>>, vector<2x32xf32>
    tpu.vector_store %arg14[%c12_71, %c0_72], %245 {strides = array<i32>} : memref<16x64xf32, #tpu.memory_space<vmem>>, vector<2x32xf32>,
    %247 = vector.extract_strided_slice %244 {offsets = [0, 32], sizes = [2, 32], strides = [1, 1]} : vector<2x64xf32> to vector<2x32xf32>
    %c2_73 = arith.constant 2 : index
    %c32_74 = arith.constant 32 : index
    %248 = vector.load %arg14[%c2_73, %c32_74] : memref<16x64xf32, #tpu.memory_space<vmem>>, vector<2x32xf32>
    tpu.vector_store %arg14[%c2_73, %c32_74], %247 {strides = array<i32>} : memref<16x64xf32, #tpu.memory_space<vmem>>, vector<2x32xf32>,
    %c14_75 = arith.constant 14 : index
    %c0_76 = arith.constant 0 : index
    %249 = vector.load %arg13[%c14_75, %c0_76] : memref<16x192xf32, #tpu.memory_space<vmem>>, vector<2x192xf32>
    %cst_77 = arith.constant dense<0.000000e+00> : vector<2x192xf32>
    %250 = tpu.matmul %244, %8, %cst_77 {dimension_numbers = #tpu.dot_dimension_numbers<[1], [0], [0], [1], [0, 0, 1, 1], [], []>} : vector<2x64xf32>, vector<64x192xf32>, vector<2x192xf32> -> vector<2x192xf32>
    %251 = vector.extract_strided_slice %249 {offsets = [0, 0], sizes = [2, 64], strides = [1, 1]} : vector<2x192xf32> to vector<2x64xf32>
    %252 = vector.extract_strided_slice %250 {offsets = [0, 0], sizes = [2, 64], strides = [1, 1]} : vector<2x192xf32> to vector<2x64xf32>
    %253 = arith.addf %251, %252 : vector<2x64xf32>
    %254 = arith.negf %253 : vector<2x64xf32>
    %255 = math.exp %254 : vector<2x64xf32>
    %cst_78 = arith.constant 1.000000e+00 : f32
    %256 = vector.broadcast %cst_78 : f32 to vector<2x64xf32>
    %257 = arith.addf %256, %255 : vector<2x64xf32>
    %258 = arith.divf %256, %257 : vector<2x64xf32>
    %259 = vector.extract_strided_slice %249 {offsets = [0, 64], sizes = [2, 64], strides = [1, 1]} : vector<2x192xf32> to vector<2x64xf32>
    %260 = vector.extract_strided_slice %250 {offsets = [0, 64], sizes = [2, 64], strides = [1, 1]} : vector<2x192xf32> to vector<2x64xf32>
    %261 = arith.addf %259, %260 : vector<2x64xf32>
    %262 = arith.negf %261 : vector<2x64xf32>
    %263 = math.exp %262 : vector<2x64xf32>
    %cst_79 = arith.constant 1.000000e+00 : f32
    %264 = vector.broadcast %cst_79 : f32 to vector<2x64xf32>
    %265 = arith.addf %264, %263 : vector<2x64xf32>
    %266 = arith.divf %264, %265 : vector<2x64xf32>
    %267 = vector.extract_strided_slice %249 {offsets = [0, 128], sizes = [2, 64], strides = [1, 1]} : vector<2x192xf32> to vector<2x64xf32>
    %268 = vector.extract_strided_slice %250 {offsets = [0, 128], sizes = [2, 64], strides = [1, 1]} : vector<2x192xf32> to vector<2x64xf32>
    %269 = vector.broadcast %9 : vector<1x64xf32> to vector<2x64xf32>
    %270 = arith.addf %268, %269 : vector<2x64xf32>
    %271 = arith.mulf %258, %270 : vector<2x64xf32>
    %272 = arith.addf %267, %271 : vector<2x64xf32>
    %273 = math.tanh %272 : vector<2x64xf32>
    %cst_80 = arith.constant 1.000000e+00 : f32
    %274 = vector.broadcast %cst_80 : f32 to vector<2x64xf32>
    %275 = arith.subf %274, %266 : vector<2x64xf32>
    %276 = arith.mulf %275, %273 : vector<2x64xf32>
    %277 = arith.mulf %266, %244 : vector<2x64xf32>
    %278 = arith.addf %276, %277 : vector<2x64xf32>
    %279 = vector.extract_strided_slice %278 {offsets = [0, 0], sizes = [2, 32], strides = [1, 1]} : vector<2x64xf32> to vector<2x32xf32>
    %c14_81 = arith.constant 14 : index
    %c0_82 = arith.constant 0 : index
    %280 = vector.load %arg14[%c14_81, %c0_82] : memref<16x64xf32, #tpu.memory_space<vmem>>, vector<2x32xf32>
    tpu.vector_store %arg14[%c14_81, %c0_82], %279 {strides = array<i32>} : memref<16x64xf32, #tpu.memory_space<vmem>>, vector<2x32xf32>,
    %281 = vector.extract_strided_slice %278 {offsets = [0, 32], sizes = [2, 32], strides = [1, 1]} : vector<2x64xf32> to vector<2x32xf32>
    %c0_83 = arith.constant 0 : index
    %c32_84 = arith.constant 32 : index
    %282 = vector.load %arg14[%c0_83, %c32_84] : memref<16x64xf32, #tpu.memory_space<vmem>>, vector<2x32xf32>
    tpu.vector_store %arg14[%c0_83, %c32_84], %281 {strides = array<i32>} : memref<16x64xf32, #tpu.memory_space<vmem>>, vector<2x32xf32>,
    %c0_85 = arith.constant 0 : index
    %c0_86 = arith.constant 0 : index
    %283 = vector.load %arg14[%c0_85, %c0_86] : memref<16x64xf32, #tpu.memory_space<vmem>>, vector<16x64xf32>
    %c0_87 = arith.constant 0 : index
    %c0_88 = arith.constant 0 : index
    %284 = vector.load %arg7[%c0_87, %c0_88] : memref<64x2xf32, #tpu.memory_space<vmem>>, vector<64x2xf32>
    %cst_89 = arith.constant dense<0.000000e+00> : vector<16x2xf32>
    %285 = tpu.matmul %283, %284, %cst_89 {dimension_numbers = #tpu.dot_dimension_numbers<[1], [0], [0], [1], [0, 0, 1, 1], [], []>} : vector<16x64xf32>, vector<64x2xf32>, vector<16x2xf32> -> vector<16x2xf32>
    %c0_90 = arith.constant 0 : index
    %c0_91 = arith.constant 0 : index
    %286 = vector.load %arg8[%c0_90, %c0_91] : memref<16x2xf32, #tpu.memory_space<vmem>>, vector<16x2xf32>
    %287 = arith.addf %285, %286 : vector<16x2xf32>
    %288 = vector.extract_strided_slice %287 {offsets = [0, 1], sizes = [16, 1], strides = [1, 1]} : vector<16x2xf32> to vector<16x1xf32>
    %289 = math.tanh %288 : vector<16x1xf32>
    %290 = math.exp %289 : vector<16x1xf32>
    %c0_92 = arith.constant 0 : index
    %c0_93 = arith.constant 0 : index
    %c0_94 = arith.constant 0 : index
    %291 = vector.load %arg2[%c0_92, %c0_93, %c0_94] : memref<1x16x1xf32, #tpu.memory_space<vmem>>, vector<1x16x1xf32>
    %292 = vector.shape_cast %291 : vector<1x16x1xf32> to vector<16x1xf32>
    %293 = arith.mulf %290, %292 : vector<16x1xf32>
    %cst_95 = arith.constant 0xFF800000 : f32
    %294 = vector.broadcast %cst_95 : f32 to vector<2x64xf32>
    %cst_96 = arith.constant 0.000000e+00 : f32
    %295 = vector.broadcast %cst_96 : f32 to vector<2x64xf32>
    %cst_97 = arith.constant 0.000000e+00 : f32
    %296 = vector.broadcast %cst_97 : f32 to vector<2x64xf32>
    %cst_98 = arith.constant 0.000000e+00 : f32
    %297 = vector.broadcast %cst_98 : f32 to vector<2x1xf32>
    %c0_99 = arith.constant 0 : index
    %c0_100 = arith.constant 0 : index
    %298 = vector.load %arg14[%c0_99, %c0_100] : memref<16x64xf32, #tpu.memory_space<vmem>>, vector<2x64xf32>
    %299 = vector.extract_strided_slice %293 {offsets = [0, 0], sizes = [2, 1], strides = [1, 1]} : vector<16x1xf32> to vector<2x1xf32>
    %300 = vector.extract_strided_slice %287 {offsets = [0, 0], sizes = [2, 1], strides = [1, 1]} : vector<16x2xf32> to vector<2x1xf32>
    %c0_101 = arith.constant 0 : index
    %c0_102 = arith.constant 0 : index
    %c0_103 = arith.constant 0 : index
    %301 = vector.load %arg11[%c0_101, %c0_102, %c0_103] : memref<1x2x8xf32, #tpu.memory_space<vmem>>, vector<1x2x1xf32>
    %302 = vector.shape_cast %301 : vector<1x2x1xf32> to vector<2x1xf32>
    %303 = vector.shape_cast %300 : vector<2x1xf32> to vector<1x2x1xf32>
    tpu.vector_store %arg11[%c0_101, %c0_102, %c0_103], %303 {strides = array<i32>} : memref<1x2x8xf32, #tpu.memory_space<vmem>>, vector<1x2x1xf32>,
    %304 = arith.maximumf %294, %298 : vector<2x64xf32>
    %305 = vector.broadcast %299 : vector<2x1xf32> to vector<2x64xf32>
    %306 = arith.mulf %305, %298 : vector<2x64xf32>
    %307 = arith.addf %295, %306 : vector<2x64xf32>
    %308 = arith.addf %296, %298 : vector<2x64xf32>
    %309 = arith.addf %297, %299 : vector<2x1xf32>
    %c2_104 = arith.constant 2 : index
    %c0_105 = arith.constant 0 : index
    %310 = vector.load %arg14[%c2_104, %c0_105] : memref<16x64xf32, #tpu.memory_space<vmem>>, vector<2x64xf32>
    %311 = vector.extract_strided_slice %293 {offsets = [2, 0], sizes = [2, 1], strides = [1, 1]} : vector<16x1xf32> to vector<2x1xf32>
    %312 = vector.extract_strided_slice %287 {offsets = [2, 0], sizes = [2, 1], strides = [1, 1]} : vector<16x2xf32> to vector<2x1xf32>
    %c0_106 = arith.constant 0 : index
    %c0_107 = arith.constant 0 : index
    %c1 = arith.constant 1 : index
    %313 = vector.load %arg11[%c0_106, %c0_107, %c1] : memref<1x2x8xf32, #tpu.memory_space<vmem>>, vector<1x2x1xf32>
    %314 = vector.shape_cast %313 : vector<1x2x1xf32> to vector<2x1xf32>
    %315 = vector.shape_cast %312 : vector<2x1xf32> to vector<1x2x1xf32>
    tpu.vector_store %arg11[%c0_106, %c0_107, %c1], %315 {strides = array<i32>} : memref<1x2x8xf32, #tpu.memory_space<vmem>>, vector<1x2x1xf32>,
    %316 = arith.maximumf %304, %310 : vector<2x64xf32>
    %317 = vector.broadcast %311 : vector<2x1xf32> to vector<2x64xf32>
    %318 = arith.mulf %317, %310 : vector<2x64xf32>
    %319 = arith.addf %307, %318 : vector<2x64xf32>
    %320 = arith.addf %308, %310 : vector<2x64xf32>
    %321 = arith.addf %309, %311 : vector<2x1xf32>
    %c4_108 = arith.constant 4 : index
    %c0_109 = arith.constant 0 : index
    %322 = vector.load %arg14[%c4_108, %c0_109] : memref<16x64xf32, #tpu.memory_space<vmem>>, vector<2x64xf32>
    %323 = vector.extract_strided_slice %293 {offsets = [4, 0], sizes = [2, 1], strides = [1, 1]} : vector<16x1xf32> to vector<2x1xf32>
    %324 = vector.extract_strided_slice %287 {offsets = [4, 0], sizes = [2, 1], strides = [1, 1]} : vector<16x2xf32> to vector<2x1xf32>
    %c0_110 = arith.constant 0 : index
    %c0_111 = arith.constant 0 : index
    %c2_112 = arith.constant 2 : index
    %325 = vector.load %arg11[%c0_110, %c0_111, %c2_112] : memref<1x2x8xf32, #tpu.memory_space<vmem>>, vector<1x2x1xf32>
    %326 = vector.shape_cast %325 : vector<1x2x1xf32> to vector<2x1xf32>
    %327 = vector.shape_cast %324 : vector<2x1xf32> to vector<1x2x1xf32>
    tpu.vector_store %arg11[%c0_110, %c0_111, %c2_112], %327 {strides = array<i32>} : memref<1x2x8xf32, #tpu.memory_space<vmem>>, vector<1x2x1xf32>,
    %328 = arith.maximumf %316, %322 : vector<2x64xf32>
    %329 = vector.broadcast %323 : vector<2x1xf32> to vector<2x64xf32>
    %330 = arith.mulf %329, %322 : vector<2x64xf32>
    %331 = arith.addf %319, %330 : vector<2x64xf32>
    %332 = arith.addf %320, %322 : vector<2x64xf32>
    %333 = arith.addf %321, %323 : vector<2x1xf32>
    %c6_113 = arith.constant 6 : index
    %c0_114 = arith.constant 0 : index
    %334 = vector.load %arg14[%c6_113, %c0_114] : memref<16x64xf32, #tpu.memory_space<vmem>>, vector<2x64xf32>
    %335 = vector.extract_strided_slice %293 {offsets = [6, 0], sizes = [2, 1], strides = [1, 1]} : vector<16x1xf32> to vector<2x1xf32>
    %336 = vector.extract_strided_slice %287 {offsets = [6, 0], sizes = [2, 1], strides = [1, 1]} : vector<16x2xf32> to vector<2x1xf32>
    %c0_115 = arith.constant 0 : index
    %c0_116 = arith.constant 0 : index
    %c3 = arith.constant 3 : index
    %337 = vector.load %arg11[%c0_115, %c0_116, %c3] : memref<1x2x8xf32, #tpu.memory_space<vmem>>, vector<1x2x1xf32>
    %338 = vector.shape_cast %337 : vector<1x2x1xf32> to vector<2x1xf32>
    %339 = vector.shape_cast %336 : vector<2x1xf32> to vector<1x2x1xf32>
    tpu.vector_store %arg11[%c0_115, %c0_116, %c3], %339 {strides = array<i32>} : memref<1x2x8xf32, #tpu.memory_space<vmem>>, vector<1x2x1xf32>,
    %340 = arith.maximumf %328, %334 : vector<2x64xf32>
    %341 = vector.broadcast %335 : vector<2x1xf32> to vector<2x64xf32>
    %342 = arith.mulf %341, %334 : vector<2x64xf32>
    %343 = arith.addf %331, %342 : vector<2x64xf32>
    %344 = arith.addf %332, %334 : vector<2x64xf32>
    %345 = arith.addf %333, %335 : vector<2x1xf32>
    %c8_117 = arith.constant 8 : index
    %c0_118 = arith.constant 0 : index
    %346 = vector.load %arg14[%c8_117, %c0_118] : memref<16x64xf32, #tpu.memory_space<vmem>>, vector<2x64xf32>
    %347 = vector.extract_strided_slice %293 {offsets = [8, 0], sizes = [2, 1], strides = [1, 1]} : vector<16x1xf32> to vector<2x1xf32>
    %348 = vector.extract_strided_slice %287 {offsets = [8, 0], sizes = [2, 1], strides = [1, 1]} : vector<16x2xf32> to vector<2x1xf32>
    %c0_119 = arith.constant 0 : index
    %c0_120 = arith.constant 0 : index
    %c4_121 = arith.constant 4 : index
    %349 = vector.load %arg11[%c0_119, %c0_120, %c4_121] : memref<1x2x8xf32, #tpu.memory_space<vmem>>, vector<1x2x1xf32>
    %350 = vector.shape_cast %349 : vector<1x2x1xf32> to vector<2x1xf32>
    %351 = vector.shape_cast %348 : vector<2x1xf32> to vector<1x2x1xf32>
    tpu.vector_store %arg11[%c0_119, %c0_120, %c4_121], %351 {strides = array<i32>} : memref<1x2x8xf32, #tpu.memory_space<vmem>>, vector<1x2x1xf32>,
    %352 = arith.maximumf %340, %346 : vector<2x64xf32>
    %353 = vector.broadcast %347 : vector<2x1xf32> to vector<2x64xf32>
    %354 = arith.mulf %353, %346 : vector<2x64xf32>
    %355 = arith.addf %343, %354 : vector<2x64xf32>
    %356 = arith.addf %344, %346 : vector<2x64xf32>
    %357 = arith.addf %345, %347 : vector<2x1xf32>
    %c10_122 = arith.constant 10 : index
    %c0_123 = arith.constant 0 : index
    %358 = vector.load %arg14[%c10_122, %c0_123] : memref<16x64xf32, #tpu.memory_space<vmem>>, vector<2x64xf32>
    %359 = vector.extract_strided_slice %293 {offsets = [10, 0], sizes = [2, 1], strides = [1, 1]} : vector<16x1xf32> to vector<2x1xf32>
    %360 = vector.extract_strided_slice %287 {offsets = [10, 0], sizes = [2, 1], strides = [1, 1]} : vector<16x2xf32> to vector<2x1xf32>
    %c0_124 = arith.constant 0 : index
    %c0_125 = arith.constant 0 : index
    %c5 = arith.constant 5 : index
    %361 = vector.load %arg11[%c0_124, %c0_125, %c5] : memref<1x2x8xf32, #tpu.memory_space<vmem>>, vector<1x2x1xf32>
    %362 = vector.shape_cast %361 : vector<1x2x1xf32> to vector<2x1xf32>
    %363 = vector.shape_cast %360 : vector<2x1xf32> to vector<1x2x1xf32>
    tpu.vector_store %arg11[%c0_124, %c0_125, %c5], %363 {strides = array<i32>} : memref<1x2x8xf32, #tpu.memory_space<vmem>>, vector<1x2x1xf32>,
    %364 = arith.maximumf %352, %358 : vector<2x64xf32>
    %365 = vector.broadcast %359 : vector<2x1xf32> to vector<2x64xf32>
    %366 = arith.mulf %365, %358 : vector<2x64xf32>
    %367 = arith.addf %355, %366 : vector<2x64xf32>
    %368 = arith.addf %356, %358 : vector<2x64xf32>
    %369 = arith.addf %357, %359 : vector<2x1xf32>
    %c12_126 = arith.constant 12 : index
    %c0_127 = arith.constant 0 : index
    %370 = vector.load %arg14[%c12_126, %c0_127] : memref<16x64xf32, #tpu.memory_space<vmem>>, vector<2x64xf32>
    %371 = vector.extract_strided_slice %293 {offsets = [12, 0], sizes = [2, 1], strides = [1, 1]} : vector<16x1xf32> to vector<2x1xf32>
    %372 = vector.extract_strided_slice %287 {offsets = [12, 0], sizes = [2, 1], strides = [1, 1]} : vector<16x2xf32> to vector<2x1xf32>
    %c0_128 = arith.constant 0 : index
    %c0_129 = arith.constant 0 : index
    %c6_130 = arith.constant 6 : index
    %373 = vector.load %arg11[%c0_128, %c0_129, %c6_130] : memref<1x2x8xf32, #tpu.memory_space<vmem>>, vector<1x2x1xf32>
    %374 = vector.shape_cast %373 : vector<1x2x1xf32> to vector<2x1xf32>
    %375 = vector.shape_cast %372 : vector<2x1xf32> to vector<1x2x1xf32>
    tpu.vector_store %arg11[%c0_128, %c0_129, %c6_130], %375 {strides = array<i32>} : memref<1x2x8xf32, #tpu.memory_space<vmem>>, vector<1x2x1xf32>,
    %376 = arith.maximumf %364, %370 : vector<2x64xf32>
    %377 = vector.broadcast %371 : vector<2x1xf32> to vector<2x64xf32>
    %378 = arith.mulf %377, %370 : vector<2x64xf32>
    %379 = arith.addf %367, %378 : vector<2x64xf32>
    %380 = arith.addf %368, %370 : vector<2x64xf32>
    %381 = arith.addf %369, %371 : vector<2x1xf32>
    %c14_131 = arith.constant 14 : index
    %c0_132 = arith.constant 0 : index
    %382 = vector.load %arg14[%c14_131, %c0_132] : memref<16x64xf32, #tpu.memory_space<vmem>>, vector<2x64xf32>
    %383 = vector.extract_strided_slice %293 {offsets = [14, 0], sizes = [2, 1], strides = [1, 1]} : vector<16x1xf32> to vector<2x1xf32>
    %384 = vector.extract_strided_slice %287 {offsets = [14, 0], sizes = [2, 1], strides = [1, 1]} : vector<16x2xf32> to vector<2x1xf32>
    %c0_133 = arith.constant 0 : index
    %c0_134 = arith.constant 0 : index
    %c7 = arith.constant 7 : index
    %385 = vector.load %arg11[%c0_133, %c0_134, %c7] : memref<1x2x8xf32, #tpu.memory_space<vmem>>, vector<1x2x1xf32>
    %386 = vector.shape_cast %385 : vector<1x2x1xf32> to vector<2x1xf32>
    %387 = vector.shape_cast %384 : vector<2x1xf32> to vector<1x2x1xf32>
    tpu.vector_store %arg11[%c0_133, %c0_134, %c7], %387 {strides = array<i32>} : memref<1x2x8xf32, #tpu.memory_space<vmem>>, vector<1x2x1xf32>,
    %388 = arith.maximumf %376, %382 : vector<2x64xf32>
    %389 = vector.broadcast %383 : vector<2x1xf32> to vector<2x64xf32>
    %390 = arith.mulf %389, %382 : vector<2x64xf32>
    %391 = arith.addf %379, %390 : vector<2x64xf32>
    %392 = arith.addf %380, %382 : vector<2x64xf32>
    %393 = arith.addf %381, %383 : vector<2x1xf32>
    %394 = vector.broadcast %393 : vector<2x1xf32> to vector<2x64xf32>
    %395 = arith.divf %391, %394 : vector<2x64xf32>
    %cst_135 = arith.constant 1.000000e-10 : f32
    %396 = vector.broadcast %cst_135 : f32 to vector<2x64xf32>
    %397 = arith.mulf %396, %392 : vector<2x64xf32>
    %398 = arith.addf %395, %397 : vector<2x64xf32>
    %c0_136 = arith.constant 0 : index
    %c0_137 = arith.constant 0 : index
    %399 = vector.load %arg9[%c0_136, %c0_137] : memref<128x9xf32, #tpu.memory_space<vmem>>, vector<64x9xf32>
    %cst_138 = arith.constant dense<0.000000e+00> : vector<2x9xf32>
    %400 = tpu.matmul %388, %399, %cst_138 {dimension_numbers = #tpu.dot_dimension_numbers<[1], [0], [0], [1], [0, 0, 1, 1], [], []>} : vector<2x64xf32>, vector<64x9xf32>, vector<2x9xf32> -> vector<2x9xf32>
    %c64 = arith.constant 64 : index
    %c0_139 = arith.constant 0 : index
    %401 = vector.load %arg9[%c64, %c0_139] : memref<128x9xf32, #tpu.memory_space<vmem>>, vector<64x9xf32>
    %cst_140 = arith.constant dense<0.000000e+00> : vector<2x9xf32>
    %402 = tpu.matmul %398, %401, %cst_140 {dimension_numbers = #tpu.dot_dimension_numbers<[1], [0], [0], [1], [0, 0, 1, 1], [], []>} : vector<2x64xf32>, vector<64x9xf32>, vector<2x9xf32> -> vector<2x9xf32>
    %403 = arith.addf %400, %402 : vector<2x9xf32>
    %c0_141 = arith.constant 0 : index
    %c0_142 = arith.constant 0 : index
    %404 = vector.load %arg10[%c0_141, %c0_142] : memref<1x9xf32, #tpu.memory_space<vmem>>, vector<1x9xf32>
    %405 = vector.broadcast %404 : vector<1x9xf32> to vector<2x9xf32>
    %406 = arith.addf %403, %405 : vector<2x9xf32>
    %c0_143 = arith.constant 0 : index
    %c0_144 = arith.constant 0 : index
    %c0_145 = arith.constant 0 : index
    %407 = vector.load %arg12[%c0_143, %c0_144, %c0_145] : memref<1x2x9xf32, #tpu.memory_space<vmem>>, vector<1x2x9xf32>
    %408 = vector.shape_cast %407 : vector<1x2x9xf32> to vector<2x9xf32>
    %409 = vector.shape_cast %406 : vector<2x9xf32> to vector<1x2x9xf32>
    tpu.vector_store %arg12[%c0_143, %c0_144, %c0_145], %409 {strides = array<i32>} : memref<1x2x9xf32, #tpu.memory_space<vmem>>, vector<1x2x9xf32>,
    return
  }
  func.func @transform_0(%arg0: i32) -> (i32, i32, i32) {
    %c0_i32 = arith.constant 0 : i32
    %c0_i32_0 = arith.constant 0 : i32
    %c0_i32_1 = arith.constant 0 : i32
    return %arg0, %c0_i32, %c0_i32_0 : i32, i32, i32
  }
  func.func @transform_1(%arg0: i32) -> (i32, i32, i32) {
    %c0_i32 = arith.constant 0 : i32
    %c0_i32_0 = arith.constant 0 : i32
    %c0_i32_1 = arith.constant 0 : i32
    return %arg0, %c0_i32, %c0_i32_0 : i32, i32, i32
  }
  func.func @transform_2(%arg0: i32) -> (i32, i32) {
    %c0_i32 = arith.constant 0 : i32
    %c0_i32_0 = arith.constant 0 : i32
    %c0_i32_1 = arith.constant 0 : i32
    return %c0_i32, %c0_i32_0 : i32, i32
  }
  func.func @transform_3(%arg0: i32) -> (i32, i32) {
    %c0_i32 = arith.constant 0 : i32
    %c0_i32_0 = arith.constant 0 : i32
    %c0_i32_1 = arith.constant 0 : i32
    return %c0_i32, %c0_i32_0 : i32, i32
  }
  func.func @transform_4(%arg0: i32) -> (i32, i32) {
    %c0_i32 = arith.constant 0 : i32
    %c0_i32_0 = arith.constant 0 : i32
    %c0_i32_1 = arith.constant 0 : i32
    return %c0_i32, %c0_i32_0 : i32, i32
  }
  func.func @transform_5(%arg0: i32) -> (i32, i32) {
    %c0_i32 = arith.constant 0 : i32
    %c0_i32_0 = arith.constant 0 : i32
    %c0_i32_1 = arith.constant 0 : i32
    return %c0_i32, %c0_i32_0 : i32, i32
  }
  func.func @transform_6(%arg0: i32) -> (i32, i32) {
    %c0_i32 = arith.constant 0 : i32
    %c0_i32_0 = arith.constant 0 : i32
    %c0_i32_1 = arith.constant 0 : i32
    return %c0_i32, %c0_i32_0 : i32, i32
  }
  func.func @transform_7(%arg0: i32) -> (i32, i32) {
    %c0_i32 = arith.constant 0 : i32
    %c0_i32_0 = arith.constant 0 : i32
    %c0_i32_1 = arith.constant 0 : i32
    return %c0_i32, %c0_i32_0 : i32, i32
  }
  func.func @transform_8(%arg0: i32) -> (i32, i32) {
    %c0_i32 = arith.constant 0 : i32
    %c0_i32_0 = arith.constant 0 : i32
    %c0_i32_1 = arith.constant 0 : i32
    return %c0_i32, %c0_i32_0 : i32, i32
  }
  func.func @transform_9(%arg0: i32) -> (i32, i32) {
    %c0_i32 = arith.constant 0 : i32
    %c0_i32_0 = arith.constant 0 : i32
    %c0_i32_1 = arith.constant 0 : i32
    return %c0_i32, %c0_i32_0 : i32, i32
  }
  func.func @transform_10(%arg0: i32) -> (i32, i32, i32) {
    %c0_i32 = arith.constant 0 : i32
    %c0_i32_0 = arith.constant 0 : i32
    %c0_i32_1 = arith.constant 0 : i32
    return %arg0, %c0_i32, %c0_i32_0 : i32, i32, i32
  }
  func.func @transform_11(%arg0: i32) -> (i32, i32, i32) {
    %c0_i32 = arith.constant 0 : i32
    %c0_i32_0 = arith.constant 0 : i32
    %c0_i32_1 = arith.constant 0 : i32
    return %arg0, %c0_i32, %c0_i32_0 : i32, i32, i32
  }
}

</mosaic_0001>

<bundles_post_ra>
// kernel: reverse
= control target key start
LH: loop header
LB: loop body
LE: loop exit
PB: predicated region body
PF: predicated region fallthrough
CT: control target
= control target key end

     0   :  { %s115_s0 = inlined_call_operand.vmem [shape: f32[2,8,16], index: 0, kind: input, shape index: {}]   ;;  %s116_s1 = inlined_call_operand.vmem [shape: f32[2,8,16], index: 1, kind: output, shape index: {}]  }
   0x1   :  { %v32_v0 = vld [vmem:[%s115_s0] sm:$0xff]  ;;  %v34_v1 = vld [vmem:[%s115_s0 + $0x8] sm:$0xff] }
   0x2   :  { %33 = vst [vmem:[#allocation0] sm:$0xff] %v32_v0 }
   0x3   :  { %35 = vst [vmem:[#allocation0 + $0x8] sm:$0xff] %v34_v1 }
   0x9   :  { %v40_v2 = vld [vmem:[#allocation0 + $0x7] ss:$-1 sm:$0xff] }
   0xa   :  { %v45_v3 = vld [vmem:[#allocation0 + $0xf] ss:$-1 sm:$0xff]  ;;  %78 = vst [vmem:[%s116_s1] sm:$0xff] %v40_v2 }
   0xb   :  { %80 = vst [vmem:[%s116_s1 + $0x8] sm:$0xff] %v45_v3 }

// kernel: penet_forward.1
= control target key start
LH: loop header
LB: loop body
LE: loop exit
PB: predicated region body
PF: predicated region fallthrough
CT: control target
= control target key end

     0   :  { %vm54_vm0 = vcmask 261120   ;;  %s1843_s0 = inlined_call_operand.vmem [shape: f32[1,16,32], index: 0, kind: input, shape index: {}]   ;;  %s1844_s1 = inlined_call_operand.vmem [shape: f32[1,16,1], index: 1, kind: input, shape index: {}]   ;;  %s1845_s2 = inlined_call_operand.vmem [shape: f32[32,192], index: 2, kind: input, shape index: {}]   ;;  %s1846_s3 = inlined_call_operand.vmem [shape: f32[1,192], index: 3, kind: input, shape index: {}]   ;;  %s1847_s4 = inlined_call_operand.vmem [shape: f32[64,192], index: 4, kind: input, shape index: {}]   ;;  %s1848_s5 = inlined_call_operand.vmem [shape: f32[1,64], index: 5, kind: input, shape index: {}]   ;;  %s1849_s6 = inlined_call_operand.vmem [shape: f32[64,2], index: 6, kind: input, shape index: {}]   ;;  %s1850_s7 = inlined_call_operand.vmem [shape: f32[16,2], index: 7, kind: input, shape index: {}]   ;;  %s1851_s8 = inlined_call_operand.vmem [shape: f32[128,9], index: 8, kind: input, shape index: {}]   ;;  %s1852_s9 = inlined_call_operand.vmem [shape: f32[1,9], index: 9, kind: input, shape index: {}]   ;;  %s1853_s10 = inlined_call_operand.hbm [shape: f32[1,2,8], index: 10, kind: output, shape index: {0}]   ;;  %s1854_s11 = inlined_call_operand.vmem [shape: f32[1,2,9], index: 11, kind: output, shape index: {1}]  }
   0x1   :  { %v1379_v0 = vld [vmem:[%s1847_s4 + $0x70] sm:$0xff]  ;;  %v1384_v1 = vld [vmem:[%s1847_s4 + $0x60] sm:$0xff]  ;;  %v1413_v8 = vld [vmem:[%s1847_s4 + $0x78] sm:$0xff] }
   0x2   :  { %v46_v2 = vld [vmem:[%s1845_s2 + $0x30] sm:$0xff]  ;;  %142 = vmatpush.msra.mxu2 %v1379_v0  ;;  %v44_v3 = vld [vmem:[%s1845_s2 + $0x20] sm:$0xff]  ;;  %v1422_v10 = vld [vmem:[%s1847_s4 + $0x68] sm:$0xff]  ;;  %162 = vmatpush.msra.mxu3 %v1413_v8 }
   0x3   :  { %73 = vmatpush.msra.mxu0 %v46_v2  ;;  %v1396_v4 = vld [vmem:[%s1847_s4 + $0x50] sm:$0xff]  ;;  %v1405_v6 = vld [vmem:[%s1847_s4 + $0x40] sm:$0xff]  ;;  %v47_v11 = vld [vmem:[%s1845_s2 + $0x38] sm:$0xff] }
   0x4   :  { %v42_v5 = vld [vmem:[%s1845_s2 + $0x10] sm:$0xff]  ;;  %143 = vmatpush.msra.mxu2 %v1384_v1  ;;  %v40_v7 = vld [vmem:[%s1845_s2] sm:$0xff]  ;;  %96 = vmatpush.msra.mxu1 %v47_v11  ;;  %v45_v13 = vld [vmem:[%s1845_s2 + $0x28] sm:$0xff] }
   0x5   :  { %74 = vmatpush.msra.mxu0 %v44_v3  ;;  %v38_v9 = vld [vmem:[%s1843_s0] sm:$0xff]  ;;  %v1430_v12 = vld [vmem:[%s1847_s4 + $0x30] sm:$0xff]  ;;  %v1440_v14 = vld [vmem:[%s1847_s4 + $0x58] sm:$0xff]  ;;  %163 = vmatpush.msra.mxu3 %v1422_v10 }
   0x6   :  { %144 = vmatpush.msra.mxu2 %v1396_v4  ;;  %v1445_v15 = vld [vmem:[%s1847_s4 + $0x20] sm:$0xff]  ;;  %v43_v16 = vld [vmem:[%s1845_s2 + $0x18] sm:$0xff]  ;;  %v1456_v17 = vld [vmem:[%s1847_s4 + $0x48] sm:$0xff]  ;;  %97 = vmatpush.msra.mxu1 %v45_v13 }
   0x7   :  { %75 = vmatpush.msra.mxu0 %v42_v5 }
   0x8   :  { %145 = vmatpush.msra.mxu2 %v1405_v6 }
   0x9   :  { %76 = vmatpush.msra.mxu0 %v40_v7 }
   0xa   :  { %1175 = vmatmul.msk.f32.vlgmr.msra.gmra.mxu0 %vm54_vm0, %v38_v9  ;;  %146 = vmatpush.msra.mxu2 %v1430_v12 }
   0xb   :  { %17 = vsyncpa [#allocation5], 0  ;;  %v1461_v18 = vld [vmem:[%s1847_s4 + $0x10] sm:$0xff]  ;;  %164 = vmatpush.msra.mxu3 %v1440_v14  ;;  %v41_v19 = vld [vmem:[%s1845_s2 + $0x8] sm:$0xff]  ;;  %229 = vmatpush.msrb.mxu0 %v1379_v0  ;;  %v1305_v24 = vmov 0.0   ;;  %vm108_vm1 = vcmask 523264  }
   0xc   :  { %147 = vmatpush.msra.mxu2 %v1445_v15  ;;  %v1472_v20 = vld [vmem:[%s1847_s4 + $0x38] sm:$0xff]  ;;  %98 = vmatpush.msra.mxu1 %v43_v16  ;;  %v1477_v21 = vld [vmem:[%s1847_s4] sm:$0xff]  ;;  %v1485_v22 = vld [vmem:[%s1847_s4 + $0x28] sm:$0xff]  ;;  %vm213_vm6 = vcmask 254976   ;;  %vm215_vm7 = vcmask 517376   ;;  %s1307_s2 = smov 1  }
   0xd   :  { %165 = vmatpush.msra.mxu3 %v1456_v17  ;;  %230 = vmatpush.msrb.mxu0 %v1384_v1  ;;  %v1493_v23 = vld [vmem:[%s1847_s4 + $0x18] sm:$0xff]  ;;  %v1500_v25 = vld [vmem:[%s1847_s4 + $0x8] sm:$0xff]  ;;  %v48_v26 = vld [vmem:[%s1846_s3] sm:$0x3]  ;;  %s1310_s26 = smov 3   ;;  %s1311_s27 = smov 5  }
   0xe   :  { %148 = vmatpush.msra.mxu2 %v1461_v18  ;;  %99 = vmatpush.msra.mxu1 %v41_v19  ;;  %v50_v27 = vperm.slane %v48_v26, 0  ;;  %v51_v30 = vperm.slane %v48_v26, 1  ;;  %v1572_v42 = vld [vmem:[%s1848_s5] ss:$0 sm:$0xff]  ;;  %s1306_s5 = smov 64   ;;  %v39_v56 = vld [vmem:[%s1843_s0 + $0x8] sm:$0xff] }
   0xf   :  { %166 = vmatpush.msra.mxu3 %v1472_v20  ;;  %1177 = vmatmul.msk.f32.vlgmr.msra.gmra.mxu1 %vm54_vm0, %v38_v9  ;;  %s1312_s4 = smov 6   ;;  %s1313_s28 = smov 4  }
  0x10   :  { %149 = vmatpush.msra.mxu2 %v1477_v21  ;;  %249 = vmatpush.msrb.mxu1 %v1413_v8  ;;  %s1314_s3 = smov 7   ;;  %s1162_s24 = sshll.u32 %s1853_s10, 4  ;;  %s1163_s24 = int_to_ptr.hbm [resolvable:$true] %s1162_s24 }
  0x11   :  { %150 = vmatmul.f32.vlgmr.msra.gmra.mxu2 %v1305_v24  ;;  %167 = vmatpush.msra.mxu3 %v1485_v22 }
  0x12   :  { %250 = vmatpush.msrb.mxu1 %v1422_v10  ;;  %231 = vmatpush.msrb.mxu0 %v1396_v4 }
  0x13   :  { %168 = vmatpush.msra.mxu3 %v1493_v23  ;;  %324 = vmatpush.msrb.mxu2 %v1379_v0 }
  0x14   :  { %251 = vmatpush.msrb.mxu1 %v1440_v14  ;;  %232 = vmatpush.msrb.mxu0 %v1405_v6 }
  0x15   :  { %169 = vmatpush.msra.mxu3 %v1500_v25  ;;  %325 = vmatpush.msrb.mxu2 %v1384_v1 }
  0x16   :  { %170 = vmatmul.f32.vlgmr.msra.gmra.mxu3 %v1305_v24  ;;  %252 = vmatpush.msrb.mxu1 %v1456_v17 }
  0x17   :  { %233 = vmatpush.msrb.mxu0 %v1430_v12  ;;  %344 = vmatpush.msrb.mxu3 %v1413_v8 }
  0x18   :  { %253 = vmatpush.msrb.mxu1 %v1472_v20  ;;  %326 = vmatpush.msrb.mxu2 %v1396_v4 }
  0x19   :  { %234 = vmatpush.msrb.mxu0 %v1445_v15  ;;  %345 = vmatpush.msrb.mxu3 %v1422_v10 }
  0x1a   :  { %254 = vmatpush.msrb.mxu1 %v1485_v22  ;;  %327 = vmatpush.msrb.mxu2 %v1405_v6 }
  0x1b   :  { %235 = vmatpush.msrb.mxu0 %v1461_v18  ;;  %346 = vmatpush.msrb.mxu3 %v1440_v14 }
  0x1c   :  { %255 = vmatpush.msrb.mxu1 %v1493_v23  ;;  %328 = vmatpush.msrb.mxu2 %v1430_v12 }
  0x1d   :  { %236 = vmatpush.msrb.mxu0 %v1477_v21  ;;  %347 = vmatpush.msrb.mxu3 %v1456_v17 }
  0x1e   :  { %256 = vmatpush.msrb.mxu1 %v1500_v25  ;;  %329 = vmatpush.msrb.mxu2 %v1445_v15 }
  0x1f   :  { %348 = vmatpush.msrb.mxu3 %v1472_v20  ;;  %419 = vmatpush.msra.mxu0 %v1379_v0 }
  0x20   :  { %330 = vmatpush.msrb.mxu2 %v1461_v18  ;;  %439 = vmatpush.msra.mxu1 %v1413_v8 }
  0x21   :  { %349 = vmatpush.msrb.mxu3 %v1485_v22  ;;  %420 = vmatpush.msra.mxu0 %v1384_v1 }
  0x22   :  { %331 = vmatpush.msrb.mxu2 %v1477_v21  ;;  %440 = vmatpush.msra.mxu1 %v1422_v10 }
  0x23   :  { %350 = vmatpush.msrb.mxu3 %v1493_v23  ;;  %421 = vmatpush.msra.mxu0 %v1396_v4 }
  0x24   :  { %441 = vmatpush.msra.mxu1 %v1440_v14  ;;  %514 = vmatpush.msra.mxu2 %v1379_v0 }
  0x25   :  { %351 = vmatpush.msrb.mxu3 %v1500_v25  ;;  %422 = vmatpush.msra.mxu0 %v1405_v6 }
  0x26   :  { %442 = vmatpush.msra.mxu1 %v1456_v17  ;;  %515 = vmatpush.msra.mxu2 %v1384_v1 }
  0x27   :  { %534 = vmatpush.msra.mxu3 %v1413_v8  ;;  %423 = vmatpush.msra.mxu0 %v1430_v12 }
  0x28   :  { %443 = vmatpush.msra.mxu1 %v1472_v20  ;;  %516 = vmatpush.msra.mxu2 %v1396_v4 }
  0x29   :  { %535 = vmatpush.msra.mxu3 %v1422_v10  ;;  %424 = vmatpush.msra.mxu0 %v1445_v15 }
  0x2a   :  { %444 = vmatpush.msra.mxu1 %v1485_v22  ;;  %517 = vmatpush.msra.mxu2 %v1405_v6 }
  0x2b   :  { %536 = vmatpush.msra.mxu3 %v1440_v14  ;;  %425 = vmatpush.msra.mxu0 %v1461_v18 }
  0x2c   :  { %445 = vmatpush.msra.mxu1 %v1493_v23  ;;  %518 = vmatpush.msra.mxu2 %v1430_v12 }
  0x2d   :  { %537 = vmatpush.msra.mxu3 %v1456_v17  ;;  %426 = vmatpush.msra.mxu0 %v1477_v21 }
  0x2e   :  { %446 = vmatpush.msra.mxu1 %v1500_v25  ;;  %519 = vmatpush.msra.mxu2 %v1445_v15 }
  0x2f   :  { %538 = vmatpush.msra.mxu3 %v1472_v20  ;;  %1176 = vmatmul.msk.f32.gmra.mxu0 %vm54_vm0, %v39_v56 }
  0x30   :  { %520 = vmatpush.msra.mxu2 %v1461_v18  ;;  %1178 = vmatmul.msk.f32.gmra.mxu1 %vm54_vm0, %v39_v56 }
  0x31   :  { %539 = vmatpush.msra.mxu3 %v1485_v22 }
  0x32   :  { %521 = vmatpush.msra.mxu2 %v1477_v21 }
  0x33   :  { %540 = vmatpush.msra.mxu3 %v1493_v23 }
  0x35   :  { %541 = vmatpush.msra.mxu3 %v1500_v25 }
  0x87   :  { %v78_v28 = vpop.f32.mrf.mxu0 }
  0x88   :  { %v79_v29 = vadd.f32 %v78_v28, %v50_v27 }
  0x8a   :  { %107 = vst [vmem:[#allocation2] sm:$0xff] %v79_v29 }
  0x8c   :  { %v101_v31 = vpop.f32.mrf.mxu1 }
  0x8d   :  { %v102_v32 = vadd.f32 %v101_v31, %v51_v30 }
  0x8f   :  { %109 = vst.msk [vmem:[#allocation2 + $0x8] sm:$0xff] %vm108_vm1, %v102_v32 }
  0x91   :  { %v129_v33 = vld [vmem:[#allocation2] sm:$0x3]  ;;  %v217_v11 = vld [vmem:[#allocation2] sm:$0xc] }
  0x94   :  { %v151_v34 = vpop.f32.mrf.mxu2 }
  0x95   :  { %v174_v35 = vadd.f32 %v151_v34, %v129_v33 }
  0x96   :  { %v130_v51 = vld [vmem:[#allocation2 + $0x8] sm:$0x3] }
  0x97   :  { %v1179_v36 = vmul.f32 -1.442695, %v174_v35 }
  0x99   :  { %1221 = vpow2.f32 %v1179_v36  ;;  %v171_v43 = vpop.f32.mrf.mxu3 }
  0x9a   :  { %v197_v48 = vadd.f32 %v1572_v42, %v171_v43  ;;  %v218_v43 = vld [vmem:[#allocation2 + $0x8] sm:$0xc] }
  0x9f   :  { %v1222_v37 = vpop.eup %1221 }
  0xa0   :  { %v178_v38 = vadd.f32 1.0, %v1222_v37 }
  0xa2   :  { %1223 = vrcp.f32 %v178_v38  ;;  %v190_v44 = vand.u32 2147483648, %v178_v38  ;;  %v188_v46 = vand.u32 2147483647, %v178_v38  ;;  %vm184_vm3 = vweird.f32 %v178_v38 }
  0xa4   :  { %v191_v49 = vor.u32 1.1754944e-38, %v190_v44  ;;  %vm189_vm5 = vcmp.eq.f32.partialorder %v188_v46, 8.507059e+37 }
  0xa8   :  { %v1224_v39 = vpop.eup %1223 }
  0xa9   :  { %v180_v40 = vmul.f32 %v1224_v39, %v178_v38  ;;  %vm185_vm2 = vweird.f32 %v1224_v39 }
  0xaa   :  { %vm186_vm4 = vmor %vm184_vm3, %vm185_vm2 }
  0xab   :  { %v181_v41 = vsub.f32 1.0, %v180_v40 }
  0xac   :  { %v81_v62 = vpop.f32.mrf.mxu0 }
  0xad   :  { %v182_v45 = vmul.f32 %v1224_v39, %v181_v41  ;;  %v104_v63 = vpop.f32.mrf.mxu1  ;;  %v82_v2 = vadd.f32 %v81_v62, %v50_v27 }
  0xae   :  { %v105_v3 = vadd.f32 %v104_v63, %v51_v30 }
  0xaf   :  { %v183_v47 = vadd.f32 %v1224_v39, %v182_v45  ;;  %110 = vst [vmem:[#allocation2 + $0x10] sm:$0xff] %v82_v2 }
  0xb0   :  { %111 = vst.msk [vmem:[#allocation2 + $0x18] sm:$0xff] %vm108_vm1, %v105_v3 }
  0xb1   :  { %v187_v50 = vsel %vm186_vm4, %v1224_v39, %v183_v47 }
  0xb2   :  { %v192_v52 = vsel %vm189_vm5, %v191_v49, %v187_v50 }
  0xb3   :  { %v198_v53 = vmul.f32 %v197_v48, %v192_v52  ;;  %v201_v57 = vsub.f32 1.0, %v192_v52  ;;  %v207_v59 = vmul.f32 0.0, %v192_v52 }
  0xb5   :  { %v199_v54 = vadd.f32 %v198_v53, %v130_v51 }
  0xb7   :  { %1225 = vtanh.f32 %v199_v54  ;;  %v309_v54 = vld [vmem:[#allocation2] sm:$0x30] }
  0xbd   :  { %v1226_v55 = vpop.eup %1225 }
  0xbe   :  { %203 = vrot.lane.b32.xlu0 %v1226_v55, %s1306_s5 }
 0x130   :  { %v204_v58 = vpop.permute.xlu0 %203 }
 0x131   :  { %v206_v60 = vmul.f32 %v204_v58, %v201_v57 }
 0x133   :  { %v208_v61 = vadd.f32 %v207_v59, %v206_v60 }
 0x135   :  { %210 = vrot.lane.b32.xlu0 %v208_v61, %s1306_s5  ;;  %v297_v36 = vrot.slane %v208_v61, 6 }
 0x1a7   :  { %v211_v5 = vpop.permute.xlu0 %210 }
 0x1a8   :  { %1180 = vmatmul.msk.f32.vlgmr.msrb.gmra.mxu0 %vm108_vm1, %v211_v5  ;;  %1181 = vmatmul.msk.f32.vlgmr.msrb.gmra.mxu1 %vm108_vm1, %v211_v5  ;;  %214 = vst.msk [vmem:[#allocation3] sm:$0x3] %vm213_vm6, %v211_v5 }
 0x1a9   :  { %597 = vmatpush.msrb.mxu0 %v1379_v0  ;;  %617 = vmatpush.msrb.mxu1 %v1413_v8  ;;  %216 = vst.msk [vmem:[#allocation3 + $0xe] sm:$0x3] %vm215_vm7, %v211_v5 }
 0x1ab   :  { %598 = vmatpush.msrb.mxu0 %v1384_v1  ;;  %618 = vmatpush.msrb.mxu1 %v1422_v10 }
 0x1ad   :  { %599 = vmatpush.msrb.mxu0 %v1396_v4  ;;  %619 = vmatpush.msrb.mxu1 %v1440_v14 }
 0x1af   :  { %600 = vmatpush.msrb.mxu0 %v1405_v6  ;;  %620 = vmatpush.msrb.mxu1 %v1456_v17 }
 0x1b1   :  { %601 = vmatpush.msrb.mxu0 %v1430_v12  ;;  %621 = vmatpush.msrb.mxu1 %v1472_v20 }
 0x1b3   :  { %602 = vmatpush.msrb.mxu0 %v1445_v15  ;;  %622 = vmatpush.msrb.mxu1 %v1485_v22 }
 0x1b5   :  { %603 = vmatpush.msrb.mxu0 %v1461_v18  ;;  %623 = vmatpush.msrb.mxu1 %v1493_v23 }
 0x1b7   :  { %604 = vmatpush.msrb.mxu0 %v1477_v21  ;;  %624 = vmatpush.msrb.mxu1 %v1500_v25 }
 0x225   :  { %v238_v7 = vpop.f32.mrf.mxu0  ;;  %v258_v28 = vpop.f32.mrf.mxu1 }
 0x226   :  { %v262_v9 = vrot.slane %v238_v7, 6  ;;  %v284_v33 = vadd.f32 %v1572_v42, %v258_v28 }
 0x228   :  { %v264_v13 = vadd.f32 %v262_v9, %v217_v11  ;;  %v286_v38 = vrot.slane %v284_v33, 6 }
 0x22a   :  { %v1182_v16 = vmul.f32 -1.442695, %v264_v13 }
 0x22c   :  { %1227 = vpow2.f32 %v1182_v16 }
 0x232   :  { %v1228_v19 = vpop.eup %1227 }
 0x233   :  { %v268_v24 = vadd.f32 1.0, %v1228_v19 }
 0x235   :  { %1229 = vrcp.f32 %v268_v24  ;;  %v280_v30 = vand.u32 2147483648, %v268_v24  ;;  %v278_v32 = vand.u32 2147483647, %v268_v24  ;;  %vm274_vm9 = vweird.f32 %v268_v24 }
 0x237   :  { %v281_v35 = vor.u32 1.1754944e-38, %v280_v30  ;;  %vm279_vm11 = vcmp.eq.f32.partialorder %v278_v32, 8.507059e+37 }
 0x23b   :  { %v1230_v26 = vpop.eup %1229 }
 0x23c   :  { %v270_v27 = vmul.f32 %v1230_v26, %v268_v24  ;;  %vm275_vm8 = vweird.f32 %v1230_v26  ;;  %v310_v24 = vld [vmem:[#allocation2 + $0x8] sm:$0x30] }
 0x23d   :  { %vm276_vm10 = vmor %vm274_vm9, %vm275_vm8 }
 0x23e   :  { %v271_v29 = vsub.f32 1.0, %v270_v27 }
 0x240   :  { %v272_v31 = vmul.f32 %v1230_v26, %v271_v29 }
 0x242   :  { %v273_v34 = vadd.f32 %v1230_v26, %v272_v31 }
 0x244   :  { %v277_v37 = vsel %vm276_vm10, %v1230_v26, %v273_v34 }
 0x245   :  { %v282_v39 = vsel %vm279_vm11, %v281_v35, %v277_v37 }
 0x246   :  { %v288_v40 = vmul.f32 %v286_v38, %v282_v39  ;;  %v299_v41 = vmul.f32 %v297_v36, %v282_v39  ;;  %v291_v46 = vsub.f32 1.0, %v282_v39 }
 0x248   :  { %v289_v44 = vadd.f32 %v288_v40, %v218_v43 }
 0x24a   :  { %1231 = vtanh.f32 %v289_v44 }
 0x250   :  { %v1232_v45 = vpop.eup %1231 }
 0x251   :  { %293 = vrot.lane.b32.xlu1 %v1232_v45, %s1306_s5 }
 0x2c3   :  { %v294_v47 = vpop.permute.xlu1 %293 }
 0x2c4   :  { %v296_v48 = vmul.f32 %v294_v47, %v291_v46 }
 0x2c6   :  { %v1605_v49 = vadd.f32 %v299_v41, %v296_v48  ;;  %v405_v41 = vld [vmem:[#allocation2 + $0x8] sm:$0xc0] }
 0x2c8   :  { %v311_v50 = vrot.slane %v1605_v49, 2  ;;  %v392_v29 = vrot.slane %v1605_v49, 6 }
 0x2ca   :  { %312 = vrot.lane.b32.xlu1 %v311_v50, %s1306_s5 }
 0x33c   :  { %v313_v51 = vpop.permute.xlu1 %312 }
 0x33d   :  { %1183 = vmatmul.msk.f32.vlgmr.msrb.gmra.mxu2 %vm108_vm1, %v313_v51  ;;  %1184 = vmatmul.msk.f32.vlgmr.msrb.gmra.mxu3 %vm108_vm1, %v313_v51 }
 0x33e   :  { %690 = vmatpush.msrb.mxu2 %v1379_v0  ;;  %710 = vmatpush.msrb.mxu3 %v1413_v8 }
 0x340   :  { %691 = vmatpush.msrb.mxu2 %v1384_v1  ;;  %711 = vmatpush.msrb.mxu3 %v1422_v10 }
 0x342   :  { %692 = vmatpush.msrb.mxu2 %v1396_v4  ;;  %712 = vmatpush.msrb.mxu3 %v1440_v14 }
 0x344   :  { %693 = vmatpush.msrb.mxu2 %v1405_v6  ;;  %713 = vmatpush.msrb.mxu3 %v1456_v17 }
 0x346   :  { %694 = vmatpush.msrb.mxu2 %v1430_v12  ;;  %714 = vmatpush.msrb.mxu3 %v1472_v20 }
 0x348   :  { %695 = vmatpush.msrb.mxu2 %v1445_v15  ;;  %715 = vmatpush.msrb.mxu3 %v1485_v22 }
 0x34a   :  { %696 = vmatpush.msrb.mxu2 %v1461_v18  ;;  %716 = vmatpush.msrb.mxu3 %v1493_v23 }
 0x34c   :  { %697 = vmatpush.msrb.mxu2 %v1477_v21  ;;  %717 = vmatpush.msrb.mxu3 %v1500_v25 }
 0x3c0   :  { %v333_v52 = vpop.f32.mrf.mxu2  ;;  %v353_v61 = vpop.f32.mrf.mxu3 }
 0x3c1   :  { %v357_v53 = vrot.slane %v333_v52, 4  ;;  %v379_v5 = vadd.f32 %v1572_v42, %v353_v61 }
 0x3c3   :  { %v359_v55 = vadd.f32 %v357_v53, %v309_v54  ;;  %v381_v13 = vrot.slane %v379_v5, 4  ;;  %v499_v54 = vld [vmem:[#allocation2 + $0x10] sm:$0x3] }
 0x3c5   :  { %v1185_v56 = vmul.f32 -1.442695, %v359_v55 }
 0x3c7   :  { %1233 = vpow2.f32 %v1185_v56 }
 0x3cd   :  { %v1234_v57 = vpop.eup %1233 }
 0x3ce   :  { %v363_v58 = vadd.f32 1.0, %v1234_v57 }
 0x3d0   :  { %1235 = vrcp.f32 %v363_v58  ;;  %v375_v63 = vand.u32 2147483648, %v363_v58  ;;  %v373_v3 = vand.u32 2147483647, %v363_v58  ;;  %vm369_vm13 = vweird.f32 %v363_v58 }
 0x3d2   :  { %v376_v9 = vor.u32 1.1754944e-38, %v375_v63  ;;  %vm374_vm15 = vcmp.eq.f32.partialorder %v373_v3, 8.507059e+37 }
 0x3d6   :  { %v1236_v59 = vpop.eup %1235 }
 0x3d7   :  { %v365_v60 = vmul.f32 %v1236_v59, %v363_v58  ;;  %vm370_vm12 = vweird.f32 %v1236_v59 }
 0x3d8   :  { %vm371_vm14 = vmor %vm369_vm13, %vm370_vm12 }
 0x3d9   :  { %v366_v62 = vsub.f32 1.0, %v365_v60 }
 0x3db   :  { %v367_v2 = vmul.f32 %v1236_v59, %v366_v62 }
 0x3dd   :  { %v368_v7 = vadd.f32 %v1236_v59, %v367_v2 }
 0x3df   :  { %v372_v11 = vsel %vm371_vm14, %v1236_v59, %v368_v7 }
 0x3e0   :  { %v377_v16 = vsel %vm374_vm15, %v376_v9, %v372_v11 }
 0x3e1   :  { %v383_v19 = vmul.f32 %v381_v13, %v377_v16  ;;  %v386_v28 = vsub.f32 1.0, %v377_v16  ;;  %v394_v31 = vmul.f32 %v392_v29, %v377_v16 }
 0x3e3   :  { %v384_v26 = vadd.f32 %v383_v19, %v310_v24  ;;  %v500_v24 = vld [vmem:[#allocation2 + $0x18] sm:$0x3] }
 0x3e5   :  { %1237 = vtanh.f32 %v384_v26 }
 0x3eb   :  { %v1238_v27 = vpop.eup %1237 }
 0x3ec   :  { %388 = vrot.lane.b32.xlu2 %v1238_v27, %s1306_s5 }
 0x446   :  { %v389_v30 = vpop.permute.xlu2 %388 }
 0x447   :  { %v391_v32 = vmul.f32 %v389_v30, %v386_v28 }
 0x449   :  { %v1630_v33 = vadd.f32 %v394_v31, %v391_v32 }
 0x44b   :  { %v406_v34 = vrot.slane %v1630_v33, 4  ;;  %v487_v46 = vrot.slane %v1630_v33, 6 }
 0x44d   :  { %407 = vrot.lane.b32.xlu2 %v406_v34, %s1306_s5 }
 0x4a7   :  { %v408_v35 = vpop.permute.xlu2 %407 }
 0x4a8   :  { %1186 = vmatmul.msk.f32.vlgmr.msra.gmra.mxu0 %vm108_vm1, %v408_v35  ;;  %1187 = vmatmul.msk.f32.vlgmr.msra.gmra.mxu1 %vm108_vm1, %v408_v35 }
 0x4a9   :  { %783 = vmatpush.msra.mxu0 %v1379_v0  ;;  %803 = vmatpush.msra.mxu1 %v1413_v8 }
 0x4ab   :  { %784 = vmatpush.msra.mxu0 %v1384_v1  ;;  %804 = vmatpush.msra.mxu1 %v1422_v10 }
 0x4ad   :  { %785 = vmatpush.msra.mxu0 %v1396_v4  ;;  %805 = vmatpush.msra.mxu1 %v1440_v14  ;;  %v404_v4 = vld [vmem:[#allocation2] sm:$0xc0] }
 0x4af   :  { %786 = vmatpush.msra.mxu0 %v1405_v6  ;;  %806 = vmatpush.msra.mxu1 %v1456_v17 }
 0x4b1   :  { %787 = vmatpush.msra.mxu0 %v1430_v12  ;;  %807 = vmatpush.msra.mxu1 %v1472_v20 }
 0x4b3   :  { %788 = vmatpush.msra.mxu0 %v1445_v15  ;;  %808 = vmatpush.msra.mxu1 %v1485_v22 }
 0x4b5   :  { %789 = vmatpush.msra.mxu0 %v1461_v18  ;;  %809 = vmatpush.msra.mxu1 %v1493_v23 }
 0x4b7   :  { %790 = vmatpush.msra.mxu0 %v1477_v21  ;;  %810 = vmatpush.msra.mxu1 %v1500_v25 }
 0x525   :  { %v428_v0 = vpop.f32.mrf.mxu0  ;;  %v448_v17 = vpop.f32.mrf.mxu1 }
 0x526   :  { %v452_v1 = vrot.slane %v428_v0, 2  ;;  %v474_v21 = vadd.f32 %v1572_v42, %v448_v17 }
 0x528   :  { %v454_v6 = vadd.f32 %v452_v1, %v404_v4  ;;  %v476_v38 = vrot.slane %v474_v21, 2  ;;  %v585_v1 = vld [vmem:[#allocation2 + $0x10] sm:$0xc] }
 0x52a   :  { %v1188_v8 = vmul.f32 -1.442695, %v454_v6 }
 0x52c   :  { %1239 = vpow2.f32 %v1188_v8 }
 0x532   :  { %v1240_v10 = vpop.eup %1239 }
 0x533   :  { %v458_v12 = vadd.f32 1.0, %v1240_v10 }
 0x535   :  { %1241 = vrcp.f32 %v458_v12  ;;  %v470_v18 = vand.u32 2147483648, %v458_v12  ;;  %v468_v23 = vand.u32 2147483647, %v458_v12  ;;  %vm464_vm2 = vweird.f32 %v458_v12 }
 0x537   :  { %v471_v36 = vor.u32 1.1754944e-38, %v470_v18  ;;  %vm469_vm4 = vcmp.eq.f32.partialorder %v468_v23, 8.507059e+37 }
 0x53b   :  { %v1242_v14 = vpop.eup %1241 }
 0x53c   :  { %v460_v15 = vmul.f32 %v1242_v14, %v458_v12  ;;  %vm465_vm0 = vweird.f32 %v1242_v14 }
 0x53d   :  { %vm466_vm3 = vmor %vm464_vm2, %vm465_vm0 }
 0x53e   :  { %v461_v20 = vsub.f32 1.0, %v460_v15 }
 0x540   :  { %v462_v22 = vmul.f32 %v1242_v14, %v461_v20 }
 0x542   :  { %v463_v25 = vadd.f32 %v1242_v14, %v462_v22 }
 0x544   :  { %v467_v37 = vsel %vm466_vm3, %v1242_v14, %v463_v25 }
 0x545   :  { %v472_v39 = vsel %vm469_vm4, %v471_v36, %v467_v37  ;;  %vm305_vm4 = vcmask 257026  }
 0x546   :  { %v478_v40 = vmul.f32 %v476_v38, %v472_v39  ;;  %v481_v45 = vsub.f32 1.0, %v472_v39  ;;  %v489_v48 = vmul.f32 %v487_v46, %v472_v39 }
 0x548   :  { %v479_v43 = vadd.f32 %v478_v40, %v405_v41 }
 0x54a   :  { %1243 = vtanh.f32 %v479_v43  ;;  %v586_v43 = vld [vmem:[#allocation2 + $0x18] sm:$0xc] }
 0x550   :  { %v1244_v44 = vpop.eup %1243 }
 0x551   :  { %483 = vrot.lane.b32.xlu0 %v1244_v44, %s1306_s5 }
 0x5c3   :  { %v484_v47 = vpop.permute.xlu0 %483 }
 0x5c4   :  { %v486_v50 = vmul.f32 %v484_v47, %v481_v45 }
 0x5c6   :  { %v1655_v51 = vadd.f32 %v489_v48, %v486_v50 }
 0x5c8   :  { %v501_v52 = vrot.slane %v1655_v51, 6 }
 0x5ca   :  { %502 = vrot.lane.b32.xlu1 %v501_v52, %s1306_s5 }
 0x63c   :  { %v503_v53 = vpop.permute.xlu1 %502 }
 0x63d   :  { %1189 = vmatmul.msk.f32.vlgmr.msra.gmra.mxu2 %vm108_vm1, %v503_v53  ;;  %1190 = vmatmul.msk.f32.vlgmr.msra.gmra.mxu3 %vm108_vm1, %v503_v53 }
 0x6c0   :  { %v523_v55 = vpop.f32.mrf.mxu2  ;;  %v543_v5 = vpop.f32.mrf.mxu3 }
 0x6c1   :  { %v546_v56 = vadd.f32 %v523_v55, %v499_v54  ;;  %v566_v13 = vadd.f32 %v1572_v42, %v543_v5 }
 0x6c3   :  { %v1191_v57 = vmul.f32 -1.442695, %v546_v56  ;;  %v675_v56 = vld [vmem:[#allocation2 + $0x10] sm:$0x30] }
 0x6c5   :  { %1245 = vpow2.f32 %v1191_v57 }
 0x6cb   :  { %v1246_v58 = vpop.eup %1245 }
 0x6cc   :  { %v550_v59 = vadd.f32 1.0, %v1246_v58 }
 0x6ce   :  { %1247 = vrcp.f32 %v550_v59  ;;  %v562_v63 = vand.u32 2147483648, %v550_v59  ;;  %v560_v3 = vand.u32 2147483647, %v550_v59  ;;  %vm556_vm8 = vweird.f32 %v550_v59 }
 0x6d0   :  { %v563_v9 = vor.u32 1.1754944e-38, %v562_v63  ;;  %vm561_vm10 = vcmp.eq.f32.partialorder %v560_v3, 8.507059e+37 }
 0x6d4   :  { %v1248_v60 = vpop.eup %1247 }
 0x6d5   :  { %v552_v61 = vmul.f32 %v1248_v60, %v550_v59  ;;  %vm557_vm5 = vweird.f32 %v1248_v60 }
 0x6d6   :  { %vm558_vm9 = vmor %vm556_vm8, %vm557_vm5  ;;  %vm307_vm5 = vcmask 519426   ;;  %vm400_vm8 = vcmask 259076  }
 0x6d7   :  { %v553_v62 = vsub.f32 1.0, %v552_v61 }
 0x6d9   :  { %v554_v2 = vmul.f32 %v1248_v60, %v553_v62 }
 0x6db   :  { %v555_v7 = vadd.f32 %v1248_v60, %v554_v2 }
 0x6dd   :  { %v559_v11 = vsel %vm558_vm9, %v1248_v60, %v555_v7  ;;  %vm402_vm9 = vcmask 521476  }
 0x6de   :  { %v564_v16 = vsel %vm561_vm10, %v563_v9, %v559_v11 }
 0x6df   :  { %v567_v19 = vmul.f32 %v566_v13, %v564_v16  ;;  %v570_v28 = vsub.f32 1.0, %v564_v16  ;;  %v577_v30 = vmul.f32 %v564_v16, %v501_v52 }
 0x6e1   :  { %v568_v26 = vadd.f32 %v567_v19, %v500_v24 }
 0x6e3   :  { %1249 = vtanh.f32 %v568_v26 }
 0x6e9   :  { %v1250_v27 = vpop.eup %1249 }
 0x6ea   :  { %572 = vrot.lane.b32.xlu2 %v1250_v27, %s1306_s5  ;;  %v676_v27 = vld [vmem:[#allocation2 + $0x18] sm:$0x30] }
 0x744   :  { %v573_v29 = vpop.permute.xlu2 %572 }
 0x745   :  { %v575_v31 = vmul.f32 %v573_v29, %v570_v28 }
 0x747   :  { %v578_v32 = vadd.f32 %v577_v30, %v575_v31 }
 0x749   :  { %580 = vrot.lane.b32.xlu0 %v578_v32, %s1306_s5  ;;  %v665_v36 = vrot.slane %v578_v32, 6 }
 0x7bb   :  { %v1664_v34 = vpop.permute.xlu0 %580 }
 0x7bc   :  { %1192 = vmatmul.msk.f32.vlgmr.msrb.gmra.mxu0 %vm108_vm1, %v1664_v34  ;;  %1193 = vmatmul.msk.f32.vlgmr.msrb.gmra.mxu1 %vm108_vm1, %v1664_v34 }
 0x839   :  { %v606_v35 = vpop.f32.mrf.mxu0  ;;  %v626_v15 = vpop.f32.mrf.mxu1 }
 0x83a   :  { %v630_v0 = vrot.slane %v606_v35, 6  ;;  %v652_v23 = vadd.f32 %v1572_v42, %v626_v15  ;;  %v768_v15 = vld [vmem:[#allocation2 + $0x10] sm:$0xc0] }
 0x83c   :  { %v632_v4 = vadd.f32 %v630_v0, %v585_v1  ;;  %v654_v38 = vrot.slane %v652_v23, 6 }
 0x83e   :  { %v1194_v6 = vmul.f32 -1.442695, %v632_v4 }
 0x840   :  { %1251 = vpow2.f32 %v1194_v6 }
 0x846   :  { %v1252_v8 = vpop.eup %1251 }
 0x847   :  { %v636_v10 = vadd.f32 1.0, %v1252_v8 }
 0x849   :  { %1253 = vrcp.f32 %v636_v10  ;;  %v648_v20 = vand.u32 2147483648, %v636_v10  ;;  %v646_v22 = vand.u32 2147483647, %v636_v10  ;;  %vm642_vm12 = vweird.f32 %v636_v10 }
 0x84b   :  { %v649_v25 = vor.u32 1.1754944e-38, %v648_v20  ;;  %vm647_vm14 = vcmp.eq.f32.partialorder %v646_v22, 8.507059e+37 }
 0x84f   :  { %v1254_v12 = vpop.eup %1253 }
 0x850   :  { %v638_v14 = vmul.f32 %v1254_v12, %v636_v10  ;;  %vm643_vm11 = vweird.f32 %v1254_v12 }
 0x851   :  { %vm644_vm13 = vmor %vm642_vm12, %vm643_vm11 }
 0x852   :  { %v639_v17 = vsub.f32 1.0, %v638_v14 }
 0x854   :  { %v640_v18 = vmul.f32 %v1254_v12, %v639_v17 }
 0x856   :  { %v641_v21 = vadd.f32 %v1254_v12, %v640_v18 }
 0x858   :  { %v645_v37 = vsel %vm644_vm13, %v1254_v12, %v641_v21 }
 0x859   :  { %v650_v39 = vsel %vm647_vm14, %v649_v25, %v645_v37  ;;  %vm495_vm14 = vcmask 261126  }
 0x85a   :  { %v656_v40 = vmul.f32 %v654_v38, %v650_v39  ;;  %v667_v41 = vmul.f32 %v665_v36, %v650_v39  ;;  %v659_v46 = vsub.f32 1.0, %v650_v39 }
 0x85c   :  { %v657_v44 = vadd.f32 %v656_v40, %v586_v43 }
 0x85e   :  { %1255 = vtanh.f32 %v657_v44 }
 0x864   :  { %v1256_v45 = vpop.eup %1255 }
 0x865   :  { %661 = vrot.lane.b32.xlu1 %v1256_v45, %s1306_s5 }
 0x8d7   :  { %v662_v47 = vpop.permute.xlu1 %661 }
 0x8d8   :  { %v664_v48 = vmul.f32 %v662_v47, %v659_v46 }
 0x8da   :  { %v668_v50 = vadd.f32 %v667_v41, %v664_v48 }
 0x8dc   :  { %v677_v52 = vrot.slane %v668_v50, 2  ;;  %v758_v31 = vrot.slane %v668_v50, 6 }
 0x8de   :  { %678 = vrot.lane.b32.xlu2 %v677_v52, %s1306_s5  ;;  %v769_v52 = vld [vmem:[#allocation2 + $0x18] sm:$0xc0] }
 0x938   :  { %v679_v53 = vpop.permute.xlu2 %678 }
 0x939   :  { %1195 = vmatmul.msk.f32.vlgmr.msrb.gmra.mxu2 %vm108_vm1, %v679_v53  ;;  %1196 = vmatmul.msk.f32.vlgmr.msrb.gmra.mxu3 %vm108_vm1, %v679_v53 }
 0x9bc   :  { %v699_v54 = vpop.f32.mrf.mxu2  ;;  %v719_v63 = vpop.f32.mrf.mxu3 }
 0x9bd   :  { %v723_v55 = vrot.slane %v699_v54, 4  ;;  %v745_v9 = vadd.f32 %v1572_v42, %v719_v63  ;;  %v865_v63 = vld [vmem:[%s1849_s6 + $0x10] sm:$0xff] }
 0x9bf   :  { %v725_v57 = vadd.f32 %v723_v55, %v675_v56  ;;  %v747_v19 = vrot.slane %v745_v9, 4  ;;  %v869_v55 = vld [vmem:[%s1849_s6 + $0x30] sm:$0xff]  ;;  %v868_v56 = vld [vmem:[%s1849_s6 + $0x28] sm:$0xff]  ;;  %v1090_v9 = vld [vmem:[%s1851_s8 + $0x20] sm:$0xff] }
 0x9c1   :  { %v1197_v58 = vmul.f32 -1.442695, %v725_v57  ;;  %v867_v57 = vld [vmem:[%s1849_s6 + $0x20] sm:$0xff] }
 0x9c3   :  { %1257 = vpow2.f32 %v1197_v58 }
 0x9c9   :  { %v1258_v59 = vpop.eup %1257 }
 0x9ca   :  { %v729_v60 = vadd.f32 1.0, %v1258_v59 }
 0x9cc   :  { %1259 = vrcp.f32 %v729_v60  ;;  %v741_v3 = vand.u32 2147483648, %v729_v60  ;;  %v739_v7 = vand.u32 2147483647, %v729_v60  ;;  %vm735_vm0 = vweird.f32 %v729_v60 }
 0x9ce   :  { %v742_v13 = vor.u32 1.1754944e-38, %v741_v3  ;;  %vm740_vm3 = vcmp.eq.f32.partialorder %v739_v7, 8.507059e+37  ;;  %v864_v3 = vld [vmem:[%s1849_s6 + $0x8] sm:$0xff] }
 0x9cf   :  { %v1091_v7 = vld [vmem:[%s1851_s8 + $0x28] sm:$0xff] }
 0x9d2   :  { %v1260_v61 = vpop.eup %1259 }
 0x9d3   :  { %v731_v62 = vmul.f32 %v1260_v61, %v729_v60  ;;  %vm736_vm15 = vweird.f32 %v1260_v61 }
 0x9d4   :  { %vm737_vm2 = vmor %vm735_vm0, %vm736_vm15  ;;  %vm497_vm15 = vcmask 523526   ;;  %vm956_vm0 = vcmask 21524  }
 0x9d5   :  { %v732_v2 = vsub.f32 1.0, %v731_v62  ;;  %v866_v62 = vld [vmem:[%s1849_s6 + $0x18] sm:$0xff] }
 0x9d7   :  { %v733_v5 = vmul.f32 %v1260_v61, %v732_v2  ;;  %v1093_v2 = vld [vmem:[%s1851_s8 + $0x38] sm:$0xff] }
 0x9d8   :  { %1136 = vmatpush.msrb.mxu0 %v1093_v2  ;;  %v1099_v2 = vld [vmem:[%s1851_s8 + $0x68] sm:$0xff] }
 0x9d9   :  { %v734_v11 = vadd.f32 %v1260_v61, %v733_v5  ;;  %v1092_v5 = vld [vmem:[%s1851_s8 + $0x30] sm:$0xff] }
 0x9da   :  { %1137 = vmatpush.msrb.mxu0 %v1092_v5 }
 0x9db   :  { %v738_v16 = vsel %vm737_vm2, %v1260_v61, %v734_v11  ;;  %v1089_v11 = vld [vmem:[%s1851_s8 + $0x18] sm:$0xff]  ;;  %vm975_vm2 = vcmask 31774  }
 0x9dc   :  { %v743_v24 = vsel %vm740_vm3, %v742_v13, %v738_v16  ;;  %1138 = vmatpush.msrb.mxu0 %v1091_v7  ;;  %v1088_v13 = vld [vmem:[%s1851_s8 + $0x10] sm:$0xff]  ;;  %v1087_v16 = vld [vmem:[%s1851_s8 + $0x8] sm:$0xff]  ;;  %vm995_vm3 = vcmask 33824  }
 0x9dd   :  { %v749_v26 = vmul.f32 %v747_v19, %v743_v24  ;;  %v752_v30 = vsub.f32 1.0, %v743_v24  ;;  %v760_v35 = vmul.f32 %v758_v31, %v743_v24  ;;  %v1086_v19 = vld [vmem:[%s1851_s8] sm:$0xff]  ;;  %v1096_v7 = vld [vmem:[%s1851_s8 + $0x50] sm:$0xff] }
 0x9de   :  { %1139 = vmatpush.msrb.mxu0 %v1090_v9  ;;  %v908_v24 = vld [vmem:[%s1844_s1] sm:$0xff] }
 0x9df   :  { %v750_v28 = vadd.f32 %v749_v26, %v676_v27  ;;  %v909_v26 = vld [vmem:[%s1844_s1 + $0x8] sm:$0xff] }
 0x9e0   :  { %1140 = vmatpush.msrb.mxu0 %v1089_v11  ;;  %v1095_v11 = vld [vmem:[%s1851_s8 + $0x48] sm:$0xff] }
 0x9e1   :  { %1261 = vtanh.f32 %v750_v28 }
 0x9e2   :  { %1141 = vmatpush.msrb.mxu0 %v1088_v13  ;;  %v1094_v13 = vld [vmem:[%s1851_s8 + $0x40] sm:$0xff] }
 0x9e4   :  { %1142 = vmatpush.msrb.mxu0 %v1087_v16 }
 0x9e6   :  { %1143 = vmatpush.msrb.mxu0 %v1086_v19 }
 0x9e7   :  { %v1262_v29 = vpop.eup %1261 }
 0x9e8   :  { %754 = vrot.lane.b32.xlu0 %v1262_v29, %s1306_s5 }
 0x9f0   :  { %302 = vrot.lane.b32.xlu0 %v1605_v49, %s1306_s5 }
 0x9f8   :  { %670 = vrot.lane.b32.xlu0 %v668_v50, %s1306_s5 }
 0xa00   :  { %912 = vrot.lane.b32.xlu0 %v908_v24, %s1307_s2 }
 0xa5a   :  { %v755_v32 = vpop.permute.xlu0 %754 }
 0xa5b   :  { %v757_v0 = vmul.f32 %v755_v32, %v752_v30 }
 0xa5d   :  { %v761_v1 = vadd.f32 %v760_v35, %v757_v0 }
 0xa5f   :  { %v770_v4 = vrot.slane %v761_v1, 4  ;;  %v851_v46 = vrot.slane %v761_v1, 6 }
 0xa61   :  { %771 = vrot.lane.b32.xlu1 %v770_v4, %s1306_s5 }
 0xa62   :  { %v303_v6 = vpop.permute.xlu0 %302 }
 0xa63   :  { %306 = vst.msk [vmem:[#allocation3] sm:$0xc] %vm305_vm4, %v303_v6 }
 0xa64   :  { %308 = vst.msk [vmem:[#allocation3 + $0xa] sm:$0xc] %vm307_vm5, %v303_v6 }
 0xa69   :  { %397 = vrot.lane.b32.xlu1 %v1630_v33, %s1306_s5 }
 0xa6a   :  { %v671_v10 = vpop.permute.xlu0 %670 }
 0xa71   :  { %763 = vrot.lane.b32.xlu1 %v761_v1, %s1306_s5 }
 0xa79   :  { %914 = vrot.lane.b32.xlu1 %v909_v26, %s1307_s2 }
 0xad3   :  { %v772_v49 = vpop.permute.xlu1 %771 }
 0xad4   :  { %1198 = vmatmul.msk.f32.vlgmr.msra.gmra.mxu0 %vm108_vm1, %v772_v49  ;;  %1199 = vmatmul.msk.f32.vlgmr.msra.gmra.mxu1 %vm108_vm1, %v772_v49 }
 0xadb   :  { %v398_v8 = vpop.permute.xlu1 %397 }
 0xadc   :  { %401 = vst.msk [vmem:[#allocation3] sm:$0x30] %vm400_vm8, %v398_v8 }
 0xadd   :  { %403 = vst.msk [vmem:[#allocation3 + $0x6] sm:$0x30] %vm402_vm9, %v398_v8 }
 0xade   :  { %673 = vst.msk [vmem:[#allocation3 + $0x8] sm:$0xc] %vm305_vm4, %v671_v10  ;;  %vm1011_vm4 = vcmask 44074  }
 0xadf   :  { %674 = vst.msk [vmem:[#allocation3 + $0x2] sm:$0xc] %vm307_vm5, %v671_v10  ;;  %vm1030_vm5 = vcmask 54324  }
 0xae3   :  { %v764_v12 = vpop.permute.xlu1 %763 }
 0xae4   :  { %766 = vst.msk [vmem:[#allocation3 + $0x8] sm:$0x30] %vm400_vm8, %v764_v12 }
 0xae5   :  { %767 = vst.msk [vmem:[#allocation3 - $0x2] sm:$0x30] %vm402_vm9, %v764_v12  ;;  %v1775_v8 = vld [vmem:[#allocation3 + $0xa] sm:$0x3] }
 0xae6   :  { %v1766_v32 = vld [vmem:[#allocation3 + $0x4] sm:$0x3] }
 0xae7   :  { %v960_v19 = vrot.slane %v1766_v32, 4 }
 0xaeb   :  { %v1779_v12 = vld [vmem:[#allocation3 + $0xc] sm:$0x3] }
 0xaec   :  { %v1761_v30 = vld [vmem:[#allocation3 + $0x2] sm:$0x3] }
 0xaed   :  { %v941_v5 = vrot.slane %v1761_v30, 6 }
 0xb51   :  { %v792_v33 = vpop.f32.mrf.mxu0  ;;  %v812_v25 = vpop.f32.mrf.mxu1 }
 0xb52   :  { %v816_v14 = vrot.slane %v792_v33, 2  ;;  %v838_v40 = vadd.f32 %v1572_v42, %v812_v25  ;;  %v870_v42 = vld [vmem:[%s1849_s6 + $0x38] sm:$0xff] }
 0xb53   :  { %887 = vmatpush.msra.mxu2 %v870_v42 }
 0xb54   :  { %v818_v17 = vadd.f32 %v816_v14, %v768_v15  ;;  %v840_v45 = vrot.slane %v838_v40, 2 }
 0xb55   :  { %888 = vmatpush.msra.mxu2 %v869_v55 }
 0xb56   :  { %v1200_v20 = vmul.f32 -1.442695, %v818_v17  ;;  %v1308_v17 = vmov 1  }
 0xb57   :  { %889 = vmatpush.msra.mxu2 %v868_v56  ;;  %1216 = vset.pattern.permute.xlu2 %v1308_v17 }
 0xb58   :  { %1263 = vpow2.f32 %v1200_v20  ;;  %1218 = vset.pattern.permute.xlu1 %v1308_v17  ;;  %1217 = vset.pattern.permute.xlu0 %v1308_v17  ;;  %v871_v20 = vld [vmem:[%s1850_s7] sm:$0xff] }
 0xb59   :  { %890 = vmatpush.msra.mxu2 %v867_v57 }
 0xb5b   :  { %891 = vmatpush.msra.mxu2 %v866_v62  ;;  %v1101_v62 = vld [vmem:[%s1851_s8 + $0x78] sm:$0xff] }
 0xb5c   :  { %1113 = vmatpush.msra.mxu3 %v1101_v62 }
 0xb5d   :  { %892 = vmatpush.msra.mxu2 %v865_v63  ;;  %v1100_v63 = vld [vmem:[%s1851_s8 + $0x70] sm:$0xff] }
 0xb5e   :  { %v1264_v18 = vpop.eup %1263  ;;  %1114 = vmatpush.msra.mxu3 %v1100_v63 }
 0xb5f   :  { %v822_v22 = vadd.f32 1.0, %v1264_v18  ;;  %893 = vmatpush.msra.mxu2 %v864_v3  ;;  %v1098_v3 = vld [vmem:[%s1851_s8 + $0x60] sm:$0xff] }
 0xb60   :  { %1115 = vmatpush.msra.mxu3 %v1099_v2 }
 0xb61   :  { %1265 = vrcp.f32 %v822_v22  ;;  %v834_v37 = vand.u32 2147483648, %v822_v22  ;;  %v832_v39 = vand.u32 2147483647, %v822_v22  ;;  %vm828_vm11 = vweird.f32 %v822_v22 }
 0xb62   :  { %1116 = vmatpush.msra.mxu3 %v1098_v3 }
 0xb63   :  { %v835_v43 = vor.u32 1.1754944e-38, %v834_v37  ;;  %vm833_vm13 = vcmp.eq.f32.partialorder %v832_v39, 8.507059e+37 }
 0xb67   :  { %v1266_v23 = vpop.eup %1265 }
 0xb68   :  { %v824_v21 = vmul.f32 %v1266_v23, %v822_v22  ;;  %vm829_vm10 = vweird.f32 %v1266_v23 }
 0xb69   :  { %vm830_vm12 = vmor %vm828_vm11, %vm829_vm10  ;;  %vm1049_vm10 = vcmask 64574  }
 0xb6a   :  { %v825_v36 = vsub.f32 1.0, %v824_v21 }
 0xb6c   :  { %v826_v38 = vmul.f32 %v1266_v23, %v825_v36 }
 0xb6e   :  { %v827_v41 = vadd.f32 %v1266_v23, %v826_v38  ;;  %v913_v38 = vpop.permute.xlu0 %912 }
 0xb70   :  { %v831_v44 = vsel %vm830_vm12, %v1266_v23, %v827_v41  ;;  %v872_v23 = vld [vmem:[%s1850_s7 + $0x8] sm:$0xff]  ;;  %s1309_s7 = smov 2  }
 0xb71   :  { %v836_v47 = vsel %vm833_vm13, %v835_v43, %v831_v44  ;;  %vm1153_vm13 = vcmask 66560  }
 0xb72   :  { %v842_v48 = vmul.f32 %v840_v45, %v836_v47  ;;  %v853_v50 = vmul.f32 %v851_v46, %v836_v47 }
 0xb74   :  { %v843_v53 = vadd.f32 %v842_v48, %v769_v52 }
 0xb76   :  { %1267 = vtanh.f32 %v843_v53 }
 0xb7c   :  { %v1268_v54 = vpop.eup %1267 }
 0xb7d   :  { %847 = vrot.lane.b32.xlu2 %v1268_v54, %s1306_s5 }
 0xb85   :  { %492 = vrot.lane.b32.xlu2 %v1655_v51, %s1306_s5  ;;  %v845_v51 = vsub.f32 1.0, %v836_v47  ;;  %v915_v47 = vpop.permute.xlu1 %914 }
 0xbd7   :  { %v848_v58 = vpop.permute.xlu2 %847 }
 0xbd8   :  { %v850_v59 = vmul.f32 %v848_v58, %v845_v51 }
 0xbda   :  { %v854_v60 = vadd.f32 %v853_v50, %v850_v59 }
 0xbdc   :  { %856 = vrot.lane.b32.xlu2 %v854_v60, %s1306_s5 }
 0xbdf   :  { %v493_v61 = vpop.permute.xlu2 %492 }
 0xbe0   :  { %496 = vst.msk [vmem:[#allocation3] sm:$0xc0] %vm495_vm14, %v493_v61 }
 0xbe1   :  { %498 = vst.msk [vmem:[#allocation3 + $0x2] sm:$0xc0] %vm497_vm15, %v493_v61 }
 0xbe2   :  { %583 = vst.msk [vmem:[#allocation3 + $0x8] sm:$0x3] %vm213_vm6, %v1664_v34  ;;  %vm921_vm6 = vcmask 1024  }
 0xbe3   :  { %584 = vst.msk [vmem:[#allocation3 + $0x6] sm:$0x3] %vm215_vm7, %v1664_v34  ;;  %v863_v34 = vld [vmem:[%s1849_s6] sm:$0xff]  ;;  %vm937_vm7 = vcmask 11274  }
 0xbe4   :  { %894 = vmatpush.msra.mxu2 %v863_v34  ;;  %v1097_v34 = vld [vmem:[%s1851_s8 + $0x58] sm:$0xff]  ;;  %s1315_s8 = smov [#allocation4]  }
 0xbe5   :  { %1117 = vmatpush.msra.mxu3 %v1097_v34 }
 0xbe7   :  { %1118 = vmatpush.msra.mxu3 %v1096_v7 }
 0xbe9   :  { %v1772_v4 = vld [vmem:[#allocation3 + $0x8] sm:$0x3]  ;;  %1119 = vmatpush.msra.mxu3 %v1095_v11 }
 0xbea   :  { %v1769_v0 = vld [vmem:[#allocation3 + $0x6] sm:$0x3] }
 0xbeb   :  { %1120 = vmatpush.msra.mxu3 %v1094_v13 }
 0xc36   :  { %v857_v27 = vpop.permute.xlu2 %856 }
 0xc37   :  { %859 = vst.msk [vmem:[#allocation3 + $0x8] sm:$0xc0] %vm495_vm14, %v857_v27 }
 0xc38   :  { %860 = vst.msk [vmem:[#allocation3 - $0x6] sm:$0xc0] %vm497_vm15, %v857_v27 }
 0xc3e   :  { %v862_v49 = vld [vmem:[#allocation3 + $0x8] sm:$0xff] }
 0xc3f   :  { %v861_v28 = vld [vmem:[#allocation3] sm:$0xff]  ;;  %v1782_v14 = vld [vmem:[#allocation3 + $0xe] sm:$0x3] }
 0xc40   :  { %v1759_v29 = vld [vmem:[#allocation3] sm:$0x3]  ;;  %1201 = vmatmul.msk.f32.vlgmr.msra.gmra.mxu2 %vm108_vm1, %v861_v28 }
 0xc41   :  { %v939_v31 = vmax.f32 %v1759_v29, %v1761_v30  ;;  %v948_v16 = vadd.f32 %v1761_v30, %v1759_v29  ;;  %v1015_v30 = vrot.slane %v1775_v8, 6 }
 0xc43   :  { %v958_v35 = vmax.f32 %v939_v31, %v1766_v32  ;;  %v967_v31 = vadd.f32 %v1766_v32, %v948_v16 }
 0xc45   :  { %v977_v1 = vmax.f32 %v958_v35, %v1769_v0  ;;  %v979_v35 = vrot.slane %v1769_v0, 2 }
 0xc47   :  { %v997_v6 = vmax.f32 %v977_v1, %v1772_v4 }
 0xc48   :  { %1202 = vmatmul.msk.f32.gmra.mxu2 %vm108_vm1, %v862_v49 }
 0xc49   :  { %v1013_v10 = vmax.f32 %v997_v6, %v1775_v8 }
 0xc4b   :  { %v1032_v33 = vmax.f32 %v1013_v10, %v1779_v12  ;;  %v986_v10 = vadd.f32 %v1769_v0, %v967_v31 }
 0xc4d   :  { %v1051_v15 = vmax.f32 %v1032_v33, %v1782_v14 }
 0xc4f   :  { %1204 = vmatmul.msk.f32.vlgmr.msrb.gmra.mxu0 %vm108_vm1, %v1051_v15 }
 0xcc3   :  { %v896_v18 = vpop.f32.mrf.mxu2 }
 0xcc4   :  { %v897_v22 = vadd.f32 %v896_v18, %v871_v20 }
 0xcc6   :  { %1269 = vtanh.f32 %v897_v22  ;;  %922 = vst.msk [vmem:[#allocation4] sm:$0x3] %vm921_vm6, %v897_v22 }
 0xccb   :  { %v899_v21 = vpop.f32.mrf.mxu2 }
 0xccc   :  { %v1270_v25 = vpop.eup %1269  ;;  %v900_v36 = vadd.f32 %v899_v21, %v872_v23  ;;  %v1034_v21 = vrot.slane %v1779_v12, 4  ;;  %v1145_v62 = vpop.f32.mrf.mxu0 }
 0xccd   :  { %v904_v37 = vmul.f32 1.442695, %v1270_v25 }
 0xcce   :  { %1271 = vtanh.f32 %v900_v36 }
 0xccf   :  { %1273 = vpow2.f32 %v904_v37 }
 0xcd4   :  { %v1272_v39 = vpop.eup %1271 }
 0xcd5   :  { %v1274_v40 = vpop.eup %1273  ;;  %v906_v41 = vmul.f32 1.442695, %v1272_v39 }
 0xcd6   :  { %v918_v43 = vmul.f32 %v1274_v40, %v913_v38  ;;  %v1053_v40 = vrot.slane %v1782_v14, 2 }
 0xcd7   :  { %1275 = vpow2.f32 %v906_v41 }
 0xcd8   :  { %v949_v44 = vrot.slane %v918_v43, 2  ;;  %925 = vperm.xlu2 %1216, %v918_v43   ;;  %v968_v46 = vrot.slane %v918_v43, 4  ;;  %v987_v48 = vrot.slane %v918_v43, 6 }
 0xcda   :  { %v951_v45 = vadd.f32 %v949_v44, %v918_v43 }
 0xcdc   :  { %v970_v50 = vadd.f32 %v968_v46, %v951_v45 }
 0xcdd   :  { %v1276_v52 = vpop.eup %1275 }
 0xcde   :  { %v919_v53 = vmul.f32 %v1276_v52, %v915_v47  ;;  %v989_v54 = vadd.f32 %v987_v48, %v970_v50 }
 0xce0   :  { %1000 = vperm.xlu1 %1218, %v919_v53   ;;  %934 = vrot.lane.b32.xlu2 %v897_v22, %s1307_s2  ;;  %v1006_v42 = vadd.f32 %v989_v54, %v919_v53  ;;  %v1023_v55 = vrot.slane %v919_v53, 2  ;;  %v1042_v57 = vrot.slane %v919_v53, 4  ;;  %v1061_v58 = vrot.slane %v919_v53, 6  ;;  %s1160_s2 = sshll.u32 %s1315_s8, 4  ;;  %s1161_s2 = int_to_ptr.vmem [resolvable:$true] %s1160_s2 }
 0xce2   :  { %v1025_v56 = vadd.f32 %v1023_v55, %v1006_v42 }
 0xce4   :  { %v1044_v51 = vadd.f32 %v1042_v57, %v1025_v56 }
 0xce6   :  { %v1063_v59 = vadd.f32 %v1061_v58, %v1044_v51 }
 0xce8   :  { %953 = vrot.lane.b32.xlu1 %v897_v22, %s1309_s7  ;;  %972 = vrot.lane.b32.xlu2 %v897_v22, %s1310_s26  ;;  %v1005_v22 = vadd.f32 %v1772_v4, %v986_v10 }
 0xce9   :  { %1066 = vperm.xlu0 %1217, %v1063_v59  }
 0xcf0   :  { %1008 = vrot.lane.b32.xlu1 %v900_v36, %s1311_s27  ;;  %1027 = vrot.lane.b32.xlu2 %v900_v36, %s1312_s4 }
 0xcf1   :  { %992 = vrot.lane.b32.xlu0 %v900_v36, %s1313_s28 }
 0xcf9   :  { %1046 = vrot.lane.b32.xlu0 %v900_v36, %s1314_s3  ;;  %v1022_v36 = vadd.f32 %v1775_v8, %v1005_v22 }
 0xd32   :  { %v926_v60 = vpop.permute.xlu2 %925 }
 0xd33   :  { %v943_v9 = vmul.f32 %v941_v5, %v926_v60  ;;  %v928_v27 = vmul.f32 %v926_v60, %v1759_v29  ;;  %v962_v28 = vmul.f32 %v960_v19, %v926_v60  ;;  %v981_v49 = vmul.f32 %v979_v35, %v926_v60 }
 0xd35   :  { %v945_v24 = vrot.slane %v943_v9, 2  ;;  %v964_v6 = vrot.slane %v962_v28, 4  ;;  %v983_v17 = vrot.slane %v981_v49, 6 }
 0xd37   :  { %v947_v1 = vadd.f32 %v945_v24, %v928_v27 }
 0xd39   :  { %v966_v33 = vadd.f32 %v964_v6, %v947_v1 }
 0xd3a   :  { %v935_v61 = vpop.permute.xlu2 %934 }
 0xd3b   :  { %938 = vst.msk [vmem:[#allocation4 - $0x2] sm:$0xc] %vm937_vm7, %v935_v61  ;;  %v985_v23 = vadd.f32 %v983_v17, %v966_v33 }
 0xd42   :  { %v973_v20 = vpop.permute.xlu2 %972 }
 0xd4a   :  { %v1028_v45 = vpop.permute.xlu2 %1027 }
 0xd52   :  { %v1001_v26 = vpop.permute.xlu1 %1000 }
 0xd53   :  { %v1003_v29 = vmul.f32 %v1001_v26, %v1772_v4  ;;  %v1017_v18 = vmul.f32 %v1015_v30, %v1001_v26  ;;  %v1036_v37 = vmul.f32 %v1034_v21, %v1001_v26  ;;  %v1041_v4 = vadd.f32 %v1779_v12, %v1022_v36 }
 0xd54   :  { %v1055_v47 = vmul.f32 %v1053_v40, %v1001_v26 }
 0xd55   :  { %v1004_v0 = vadd.f32 %v1003_v29, %v985_v23  ;;  %v1019_v25 = vrot.slane %v1017_v18, 2  ;;  %v1038_v46 = vrot.slane %v1036_v37, 4  ;;  %v1060_v54 = vadd.f32 %v1782_v14, %v1041_v4  ;;  %v1220_v14 = vld [vmem:[%s1852_s9] ss:$0 sm:$0xff] }
 0xd56   :  { %v1057_v42 = vrot.slane %v1055_v47, 6 }
 0xd57   :  { %v1021_v41 = vadd.f32 %v1019_v25, %v1004_v0  ;;  %v1084_v60 = vmul.f32 1e-10, %v1060_v54 }
 0xd59   :  { %v1040_v50 = vadd.f32 %v1038_v46, %v1021_v41 }
 0xd5a   :  { %v954_v15 = vpop.permute.xlu1 %953 }
 0xd5b   :  { %957 = vst.msk [vmem:[#allocation4 - $0x4] sm:$0x30] %vm956_vm0, %v954_v15  ;;  %v1067_v32 = vpop.permute.xlu0 %1066  ;;  %v1059_v12 = vadd.f32 %v1057_v42, %v1040_v50 }
 0xd5c   :  { %1277 = vrcp.f32 %v1067_v32  ;;  %976 = vst.msk [vmem:[#allocation4 - $0x6] sm:$0xc0] %vm975_vm2, %v973_v20  ;;  %v1080_v8 = vand.u32 2147483648, %v1067_v32  ;;  %v1078_v53 = vand.u32 2147483647, %v1067_v32  ;;  %vm1074_vm9 = vweird.f32 %v1067_v32 }
 0xd5e   :  { %v1081_v56 = vor.u32 1.1754944e-38, %v1080_v8  ;;  %vm1079_vm12 = vcmp.eq.f32.partialorder %v1078_v53, 8.507059e+37 }
 0xd62   :  { %v1278_v38 = vpop.eup %1277  ;;  %v1009_v39 = vpop.permute.xlu1 %1008 }
 0xd63   :  { %v1070_v43 = vmul.f32 %v1278_v38, %v1067_v32  ;;  %v993_v44 = vpop.permute.xlu0 %992  ;;  %vm1075_vm8 = vweird.f32 %v1278_v38 }
 0xd64   :  { %996 = vst.msk [vmem:[#allocation4] sm:$0x3] %vm995_vm3, %v993_v44  ;;  %vm1076_vm11 = vmor %vm1074_vm9, %vm1075_vm8 }
 0xd65   :  { %v1071_v48 = vsub.f32 1.0, %v1070_v43  ;;  %1012 = vst.msk [vmem:[#allocation4 - $0x2] sm:$0xc] %vm1011_vm4, %v1009_v39 }
 0xd66   :  { %1031 = vst.msk [vmem:[#allocation4 - $0x4] sm:$0x30] %vm1030_vm5, %v1028_v45 }
 0xd67   :  { %v1072_v52 = vmul.f32 %v1278_v38, %v1071_v48 }
 0xd69   :  { %v1073_v55 = vadd.f32 %v1278_v38, %v1072_v52 }
 0xd6b   :  { %v1077_v57 = vsel %vm1076_vm11, %v1278_v38, %v1073_v55  ;;  %v1047_v51 = vpop.permute.xlu0 %1046 }
 0xd6c   :  { %v1082_v58 = vsel %vm1079_vm12, %v1081_v56, %v1077_v57  ;;  %1050 = vst.msk [vmem:[#allocation4 - $0x6] sm:$0xc0] %vm1049_vm10, %v1047_v51 }
 0xd6d   :  { %v1083_v59 = vmul.f32 %v1082_v58, %v1059_v12  ;;  %1165 = dma.vmem_to_hbm [thread:$0]  %s1161_s2, 32, %s1163_s24, [#allocation5]  }
 0xd6f   :  { %v1085_v61 = vadd.f32 %v1084_v60, %v1083_v59 }
 0xd71   :  { %1203 = vmatmul.msk.f32.vlgmr.msra.gmra.mxu3 %vm108_vm1, %v1085_v61 }
 0xdf4   :  { %v1122_v63 = vpop.f32.mrf.mxu3 }
 0xdf5   :  { %v1146_v2 = vadd.f32 %v1145_v62, %v1122_v63 }
 0xdf7   :  { %v1152_v3 = vadd.f32 %v1220_v14, %v1146_v2 }
 0xdf9   :  { %1154 = vst.msk [vmem:[%s1854_s11] sm:$0x3] %vm1153_vm13, %v1152_v3 }
 0xdfa   :  { %1303 = dma.done.wait [#allocation5], 32  }
 0xdfb   :  { %1304 = vsyncadd [#allocation5], 4294967264 }
 0xdfc   :  { %1174 = vsyncpa [#allocation5], 1 }

</bundles_post_ra>
